<compile_context>
chip_gen: v5e
topology: v5e:2x2
jax: 0.10.0
libtpu: 0.0.40
codegen_flags: <defaults>
</compile_context>

<pallas_src>
import functools

import jax
import jax.numpy as jnp
from jax.experimental import pallas as pl
from jax.experimental.pallas import tpu as pltpu


SHIFT = 0
REDUCE = 1


# -----------------------------------------------------------------------------
# Pallas kernels
# -----------------------------------------------------------------------------
def _bilstm_proj_kernel(x_ref, wih_ref, whh_ref, b_ref, wproj_ref, o_ref,
                        xg_sc, h_sc, *, batch):
    """Fused bidirectional LSTM + output projection, single grid point.

    x_ref:    (T*B, D)   time-major flattened embeddings (row = t*B + b)
    wih_ref:  (D, 8D)    [fwd i,f,g,o | bwd i,f,g,o] input weights
    whh_ref:  (2D, 8D)   block-diagonal recurrent weights (rows: [h_f; h_b])
    b_ref:    (1, 8D)    [fwd bias | bwd bias]
    wproj_ref:(2D, D)    projection Linear(2D -> D, bias=False)
    o_ref:    (T*B, D)   projected outputs
    xg_sc:    (T*B, 8D)  scratch: precomputed input gates (both directions)
    h_sc:     (T*B, 2D)  scratch: [h_fwd | h_bwd] per original timestep
    """
    TB, D = x_ref.shape
    T = TB // batch
    G4 = 4 * D

    # Hoisted input projection: all timesteps, both directions, one MXU matmul.
    xg_sc[...] = jnp.dot(x_ref[...], wih_ref[...],
                         preferred_element_type=jnp.float32)

    b_f = b_ref[:, 0:G4]
    b_b = b_ref[:, G4:2 * G4]

    def gate(gates, c_prev):
        # PyTorch LSTM gate order: i, f, g, o
        i = jax.nn.sigmoid(gates[:, 0:D])
        f = jax.nn.sigmoid(gates[:, D:2 * D])
        g = jnp.tanh(gates[:, 2 * D:3 * D])
        o = jax.nn.sigmoid(gates[:, 3 * D:4 * D])
        c = f * c_prev + i * g
        h = o * jnp.tanh(c)
        return h, c

    def step(t, carry):
        h_cat, c_f, c_b = carry
        tb = T - 1 - t  # backward direction walks the sequence reversed

        # One 128-lane MXU push covers both directions' recurrent gates.
        hg = jnp.dot(h_cat, whh_ref[...], preferred_element_type=jnp.float32)

        xg_f = xg_sc[pl.ds(t * batch, batch), 0:G4]
        xg_b = xg_sc[pl.ds(tb * batch, batch), G4:2 * G4]

        h_f, c_f = gate(xg_f + hg[:, 0:G4] + b_f, c_f)
        h_b, c_b = gate(xg_b + hg[:, G4:2 * G4] + b_b, c_b)

        h_sc[pl.ds(t * batch, batch), 0:D] = h_f
        h_sc[pl.ds(tb * batch, batch), D:2 * D] = h_b
        return jnp.concatenate([h_f, h_b], axis=1), c_f, c_b

    h0 = jnp.zeros((batch, 2 * D), jnp.float32)
    c0 = jnp.zeros((batch, D), jnp.float32)
    jax.lax.fori_loop(0, T, step, (h0, c0, c0), unroll=True)

    # Fused output projection epilogue (Linear(2D -> D), bias=False).
    o_ref[...] = jnp.dot(h_sc[...], wproj_ref[...],
                         preferred_element_type=jnp.float32)


@functools.partial(jax.jit, static_argnames=("batch",))
def bilstm_project(x_tbd_flat, w_ih_cat, w_hh_blk, b_cat, w_proj, *, batch):
    TB, D = x_tbd_flat.shape
    G = 8 * D
    kernel = functools.partial(_bilstm_proj_kernel, batch=batch)
    return pl.pallas_call(
        kernel,
        out_shape=jax.ShapeDtypeStruct((TB, D), jnp.float32),
        grid_spec=pltpu.PrefetchScalarGridSpec(
            num_scalar_prefetch=0,
            grid=(1,),
            in_specs=[
                pl.BlockSpec((TB, D), lambda i: (0, 0)),
                pl.BlockSpec((D, G), lambda i: (0, 0)),
                pl.BlockSpec((2 * D, G), lambda i: (0, 0)),
                pl.BlockSpec((1, G), lambda i: (0, 0)),
                pl.BlockSpec((2 * D, D), lambda i: (0, 0)),
            ],
            out_specs=pl.BlockSpec((TB, D), lambda i: (0, 0)),
            scratch_shapes=[pltpu.VMEM((TB, G), jnp.float32),
                            pltpu.VMEM((TB, 2 * D), jnp.float32)],
        ),
        compiler_params=pltpu.CompilerParams(
            dimension_semantics=("arbitrary",)),
    )(x_tbd_flat, w_ih_cat, w_hh_blk, b_cat, w_proj)


def _tree_reduce_kernel(idx_ref, leaf_ref, w_ref, b_ref, nodes_ref, c_sc):
    """Whole shift-reduce tree build for one example in a single kernel.

    idx_ref:  (2R,) int32 in SMEM (scalar prefetch): [l0, r0, l1, r1, ...]
    leaf_ref: (L, D)   projected leaf embeddings
    w_ref:    (2D, 5D) fused tree-cell weight (one matmul per reduce)
    b_ref:    (1, 5D)
    nodes_ref:(L+R, D) output node features (leaves first, then reduce nodes)
    c_sc:     (L+R, D) scratch cell states (leaves have c = 0)
    """
    L, D = leaf_ref.shape
    R = idx_ref.shape[0] // 2

    nodes_ref[0:L, :] = leaf_ref[...]
    c_sc[...] = jnp.zeros_like(c_sc)

    def body(r, carry):
        li = idx_ref[2 * r]
        ri = idx_ref[2 * r + 1]
        h1 = nodes_ref[pl.ds(li, 1), :]
        h2 = nodes_ref[pl.ds(ri, 1), :]
        c1 = c_sc[pl.ds(li, 1), :]
        c2 = c_sc[pl.ds(ri, 1), :]
        gates = (jnp.dot(jnp.concatenate([h1, h2], axis=1), w_ref[...],
                         preferred_element_type=jnp.float32) + b_ref[...])
        # BinaryTreeLSTMLayer gate order: i, f1, f2, o, g
        i = jax.nn.sigmoid(gates[:, 0:D])
        f1 = jax.nn.sigmoid(gates[:, D:2 * D])
        f2 = jax.nn.sigmoid(gates[:, 2 * D:3 * D])
        o = jax.nn.sigmoid(gates[:, 3 * D:4 * D])
        g = jnp.tanh(gates[:, 4 * D:5 * D])
        c = f1 * c1 + f2 * c2 + i * g
        h = o * jnp.tanh(c)
        nodes_ref[pl.ds(L + r, 1), :] = h
        c_sc[pl.ds(L + r, 1), :] = c
        return carry

    jax.lax.fori_loop(0, R, body, 0, unroll=True)


@jax.jit
def tree_reduce(idx, leaves, w_tree, b_tree):
    L, D = leaves.shape
    R = idx.shape[0] // 2
    N = L + R
    return pl.pallas_call(
        _tree_reduce_kernel,
        out_shape=jax.ShapeDtypeStruct((N, D), jnp.float32),
        grid_spec=pltpu.PrefetchScalarGridSpec(
            num_scalar_prefetch=1,
            grid=(1,),
            in_specs=[
                pl.BlockSpec((L, D), lambda i, idx_ref: (0, 0)),
                pl.BlockSpec((2 * D, 5 * D), lambda i, idx_ref: (0, 0)),
                pl.BlockSpec((1, 5 * D), lambda i, idx_ref: (0, 0)),
            ],
            out_specs=pl.BlockSpec((N, D), lambda i, idx_ref: (0, 0)),
            scratch_shapes=[pltpu.VMEM((N, D), jnp.float32)],
        ),
        compiler_params=pltpu.CompilerParams(
            dimension_semantics=("arbitrary",)),
    )(idx, leaves, w_tree, b_tree)


# -----------------------------------------------------------------------------
# Model (parameters + forward)
# -----------------------------------------------------------------------------
def init_params(key, vocab=10, dim=16):
    ks = jax.random.split(key, 12)
    u = lambda k, shape, bound: jax.random.uniform(
        k, shape, jnp.float32, -bound, bound)
    b_lstm = 1.0 / jnp.sqrt(dim)
    b_lin = 1.0 / jnp.sqrt(2 * dim)

    # per-direction LSTM weights (pre-transposed to (in, out), gate order i,f,g,o)
    w_ih_f = u(ks[1], (dim, 4 * dim), b_lstm)
    w_hh_f = u(ks[2], (dim, 4 * dim), b_lstm)
    b_f = u(ks[3], (1, 4 * dim), b_lstm) + u(ks[4], (1, 4 * dim), b_lstm)
    w_ih_b = u(ks[5], (dim, 4 * dim), b_lstm)
    w_hh_b = u(ks[6], (dim, 4 * dim), b_lstm)
    b_b = u(ks[7], (1, 4 * dim), b_lstm) + u(ks[8], (1, 4 * dim), b_lstm)

    zeros = jnp.zeros((dim, 4 * dim), jnp.float32)
    params = {
        "emb": jax.random.normal(ks[0], (vocab, dim), jnp.float32),
        # fused bi-LSTM weights: columns = [fwd gates (4D) | bwd gates (4D)]
        "w_ih_cat": jnp.concatenate([w_ih_f, w_ih_b], axis=1),          # (D, 8D)
        "w_hh_blk": jnp.concatenate(
            [jnp.concatenate([w_hh_f, zeros], axis=1),
             jnp.concatenate([zeros, w_hh_b], axis=1)], axis=0),        # (2D, 8D)
        "b_cat": jnp.concatenate([b_f, b_b], axis=1),                   # (1, 8D)
        # projection Linear(2*dim -> dim, bias=False), pre-transposed
        "w_proj": u(ks[9], (2 * dim, dim), b_lin),                      # (2D, D)
        # tree-cell Linear(2*dim -> 5*dim), single fused weight
        "w_tree": jnp.concatenate([u(ks[10], (dim, 5 * dim), b_lin),
                                   u(ks[11], (dim, 5 * dim), b_lin)],
                                  axis=0),                              # (2D, 5D)
        "b_tree": u(jax.random.fold_in(key, 99), (1, 5 * dim), b_lin),
    }
    return params


def get_actions(spans, l):
    spans_set = set([(s[0], s[1]) for s in spans if s[0] < s[1]])
    actions = [SHIFT, SHIFT]
    stack = [(0, 0), (1, 1)]
    ptr = 2
    while ptr < l:
        if len(stack) >= 2:
            cand_span = (stack[-2][0], stack[-1][1])
        else:
            cand_span = (-1, -1)
        if cand_span in spans_set:
            actions.append(REDUCE)
            stack.pop()
            stack.pop()
            stack.append(cand_span)
        else:
            actions.append(SHIFT)
            stack.append((ptr, ptr))
            ptr += 1
    while len(actions) < 2 * l - 1:
        actions.append(REDUCE)
    return actions


def build_reduce_schedule(actions, len_b):
    """Host-side simulation of the shift-reduce stack: produces the child node
    indices consumed by each REDUCE plus the span bookkeeping."""
    spans_b = [(i, i, -1) for i in range(len_b)]
    stack = []          # entries: (node_index, (lo, hi))
    ptr = 0
    next_idx = len_b
    child_idx = []      # flat [l0, r0, l1, r1, ...]
    for action in actions:
        if action == SHIFT:
            stack.append((ptr, (ptr, ptr)))
            ptr += 1
        else:
            right = stack.pop()
            left = stack.pop()
            child_idx.extend([left[0], right[0]])
            new_span = (left[1][0], right[1][1])
            spans_b.append((new_span[0], new_span[1], -1))
            stack.append((next_idx, new_span))
            next_idx += 1
    return child_idx, spans_b


def binary_tree_lstm_forward(params, x, lengths, spans):
    """x: (B, T) int32 token ids; lengths: list[int]; spans: list[list[(i,j)]]."""
    batch, length = x.shape
    dim = params["emb"].shape[1]

    # Embedding lookup (gather) - glue.
    word_emb = params["emb"][x]                                  # (B, T, D)

    # Fused bidirectional LSTM + projection (one Pallas kernel).
    # NOTE: like the PyTorch reference (which calls self.lstm on the padded
    # tensor without packing), padding timesteps are processed by the LSTM.
    x_flat = jnp.transpose(word_emb, (1, 0, 2)).reshape(length * batch, dim)
    proj = bilstm_project(x_flat, params["w_ih_cat"], params["w_hh_blk"],
                          params["b_cat"], params["w_proj"], batch=batch)
    word_emb_proj = jnp.transpose(
        proj.reshape(length, batch, dim), (1, 0, 2))             # (B, T, D)

    node_features = []
    all_spans = []
    # TODO(synk): get_actions / stack-schedule construction is data-dependent
    # host control flow (mirrors the PyTorch Python loop); only the schedule
    # is computed here — all cell math for an example runs in one Pallas call.
    for b in range(batch):
        len_b = int(lengths[b])
        actions = [] if len_b == 1 else get_actions(spans[b], len_b)
        child_idx, spans_b = build_reduce_schedule(actions, len_b)
        leaves = word_emb_proj[b, :len_b]                        # (L, D)
        if child_idx:
            idx = jnp.asarray(child_idx, dtype=jnp.int32)        # (2R,)
            nodes = tree_reduce(idx, leaves, params["w_tree"],
                                params["b_tree"])                # (2L-1, D)
        else:
            nodes = leaves
        node_features.append(nodes)
        all_spans.append(spans_b)
    return node_features, all_spans


# -----------------------------------------------------------------------------
# Main
# -----------------------------------------------------------------------------
if __name__ == "__main__":
    VOCAB, DIM = 10, 16
    BATCH, LENGTH = 2, 8

    key = jax.random.PRNGKey(0)
    pkey, xkey = jax.random.split(key)
    params = init_params(pkey, vocab=VOCAB, dim=DIM)

    x = jax.random.randint(xkey, (BATCH, LENGTH), 0, VOCAB, dtype=jnp.int32)
    lengths = [8, 5]
    # batch 0: left-branching gold tree; batch 1: right-branching gold tree
    spans = [
        [(0, j) for j in range(1, lengths[0])],
        [(j, lengths[1] - 1) for j in range(lengths[1] - 2, -1, -1)],
    ]

    node_features, all_spans = binary_tree_lstm_forward(params, x, lengths, spans)
    for nf in node_features:
        jax.block_until_ready(nf)

    # shape sanity: 2*len_b - 1 nodes per example, each of width DIM
    assert node_features[0].shape == (2 * lengths[0] - 1, DIM)
    assert node_features[1].shape == (2 * lengths[1] - 1, DIM)
    assert len(all_spans[0]) == 2 * lengths[0] - 1
    assert len(all_spans[1]) == 2 * lengths[1] - 1
    assert all(bool(jnp.all(jnp.isfinite(nf))) for nf in node_features)

    print("KERNEL_OK")
</pallas_src>

<mosaic_0001>
module attributes {stable_mosaic.version = 11 : i64} {
  func.func @_bilstm_proj_kernel(%arg0: i32, %arg1: memref<16x16xf32, #tpu.memory_space<vmem>>, %arg2: memref<16x128xf32, #tpu.memory_space<vmem>>, %arg3: memref<32x128xf32, #tpu.memory_space<vmem>>, %arg4: memref<1x128xf32, #tpu.memory_space<vmem>>, %arg5: memref<32x16xf32, #tpu.memory_space<vmem>>, %arg6: memref<16x16xf32, #tpu.memory_space<vmem>>, %arg7: memref<16x128xf32, #tpu.memory_space<vmem>>, %arg8: memref<16x32xf32, #tpu.memory_space<vmem>>) attributes {dimension_semantics = [#tpu.dimension_semantics<arbitrary>], iteration_bounds = array<i64: 1>, scalar_prefetch = 0 : i64, scratch_operands = 2 : i64, tpu.core_type = #tpu.core_type<tc>, window_params = [{pipeline_mode = #tpu.pipeline_mode<synchronous>, transform_indices = @transform_0, window_bounds = array<i64: 16, 16>}, {pipeline_mode = #tpu.pipeline_mode<synchronous>, transform_indices = @transform_1, window_bounds = array<i64: 16, 128>}, {pipeline_mode = #tpu.pipeline_mode<synchronous>, transform_indices = @transform_2, window_bounds = array<i64: 32, 128>}, {pipeline_mode = #tpu.pipeline_mode<synchronous>, transform_indices = @transform_3, window_bounds = array<i64: 1, 128>}, {pipeline_mode = #tpu.pipeline_mode<synchronous>, transform_indices = @transform_4, window_bounds = array<i64: 32, 16>}, {pipeline_mode = #tpu.pipeline_mode<synchronous>, transform_indices = @transform_5, window_bounds = array<i64: 16, 16>}]} {
    %c0 = arith.constant 0 : index
    %c0_0 = arith.constant 0 : index
    %0 = vector.load %arg1[%c0, %c0_0] : memref<16x16xf32, #tpu.memory_space<vmem>>, vector<16x16xf32>
    %c0_1 = arith.constant 0 : index
    %c0_2 = arith.constant 0 : index
    %1 = vector.load %arg2[%c0_1, %c0_2] : memref<16x128xf32, #tpu.memory_space<vmem>>, vector<16x128xf32>
    %cst = arith.constant dense<0.000000e+00> : vector<16x128xf32>
    %2 = tpu.matmul %0, %1, %cst {dimension_numbers = #tpu.dot_dimension_numbers<[1], [0], [0], [1], [0, 0, 1, 1], [], []>} : vector<16x16xf32>, vector<16x128xf32>, vector<16x128xf32> -> vector<16x128xf32>
    %c0_3 = arith.constant 0 : index
    %c0_4 = arith.constant 0 : index
    %3 = vector.load %arg7[%c0_3, %c0_4] : memref<16x128xf32, #tpu.memory_space<vmem>>, vector<16x128xf32>
    tpu.vector_store %arg7[%c0_3, %c0_4], %2 {strides = array<i32>} : memref<16x128xf32, #tpu.memory_space<vmem>>, vector<16x128xf32>,
    %c0_5 = arith.constant 0 : index
    %c0_6 = arith.constant 0 : index
    %4 = vector.load %arg4[%c0_5, %c0_6] : memref<1x128xf32, #tpu.memory_space<vmem>>, vector<1x64xf32>
    %c0_7 = arith.constant 0 : index
    %c64 = arith.constant 64 : index
    %5 = vector.load %arg4[%c0_7, %c64] : memref<1x128xf32, #tpu.memory_space<vmem>>, vector<1x64xf32>
    %cst_8 = arith.constant 0.000000e+00 : f32
    %6 = vector.broadcast %cst_8 : f32 to vector<2x32xf32>
    %cst_9 = arith.constant 0.000000e+00 : f32
    %7 = vector.broadcast %cst_9 : f32 to vector<2x16xf32>
    %c0_i32 = arith.constant 0 : i32
    %c7_i32 = arith.constant 7 : i32
    %8 = arith.subi %c7_i32, %c0_i32 : i32
    %c0_10 = arith.constant 0 : index
    %c0_11 = arith.constant 0 : index
    %9 = vector.load %arg3[%c0_10, %c0_11] : memref<32x128xf32, #tpu.memory_space<vmem>>, vector<32x128xf32>
    %cst_12 = arith.constant dense<0.000000e+00> : vector<2x128xf32>
    %10 = tpu.matmul %6, %9, %cst_12 {dimension_numbers = #tpu.dot_dimension_numbers<[1], [0], [0], [1], [0, 0, 1, 1], [], []>} : vector<2x32xf32>, vector<32x128xf32>, vector<2x128xf32> -> vector<2x128xf32>
    %c2_i32 = arith.constant 2 : i32
    %11 = arith.muli %c0_i32, %c2_i32 : i32
    %12 = arith.index_cast %11 : i32 to index
    %c0_13 = arith.constant 0 : index
    %13 = vector.load %arg7[%12, %c0_13] : memref<16x128xf32, #tpu.memory_space<vmem>>, vector<2x64xf32>
    %c2_i32_14 = arith.constant 2 : i32
    %14 = arith.muli %8, %c2_i32_14 : i32
    %15 = arith.index_cast %14 : i32 to index
    %c64_15 = arith.constant 64 : index
    %16 = vector.load %arg7[%15, %c64_15] : memref<16x128xf32, #tpu.memory_space<vmem>>, vector<2x64xf32>
    %17 = vector.extract_strided_slice %10 {offsets = [0, 0], sizes = [2, 64], strides = [1, 1]} : vector<2x128xf32> to vector<2x64xf32>
    %18 = arith.addf %13, %17 : vector<2x64xf32>
    %19 = vector.broadcast %4 : vector<1x64xf32> to vector<2x64xf32>
    %20 = arith.addf %18, %19 : vector<2x64xf32>
    %21 = vector.extract_strided_slice %20 {offsets = [0, 0], sizes = [2, 16], strides = [1, 1]} : vector<2x64xf32> to vector<2x16xf32>
    %22 = arith.negf %21 : vector<2x16xf32>
    %23 = math.exp %22 : vector<2x16xf32>
    %cst_16 = arith.constant 1.000000e+00 : f32
    %24 = vector.broadcast %cst_16 : f32 to vector<2x16xf32>
    %25 = arith.addf %24, %23 : vector<2x16xf32>
    %26 = arith.divf %24, %25 : vector<2x16xf32>
    %27 = vector.extract_strided_slice %20 {offsets = [0, 16], sizes = [2, 16], strides = [1, 1]} : vector<2x64xf32> to vector<2x16xf32>
    %28 = arith.negf %27 : vector<2x16xf32>
    %29 = math.exp %28 : vector<2x16xf32>
    %cst_17 = arith.constant 1.000000e+00 : f32
    %30 = vector.broadcast %cst_17 : f32 to vector<2x16xf32>
    %31 = arith.addf %30, %29 : vector<2x16xf32>
    %32 = arith.divf %30, %31 : vector<2x16xf32>
    %33 = vector.extract_strided_slice %20 {offsets = [0, 32], sizes = [2, 16], strides = [1, 1]} : vector<2x64xf32> to vector<2x16xf32>
    %34 = math.tanh %33 : vector<2x16xf32>
    %35 = vector.extract_strided_slice %20 {offsets = [0, 48], sizes = [2, 16], strides = [1, 1]} : vector<2x64xf32> to vector<2x16xf32>
    %36 = arith.negf %35 : vector<2x16xf32>
    %37 = math.exp %36 : vector<2x16xf32>
    %cst_18 = arith.constant 1.000000e+00 : f32
    %38 = vector.broadcast %cst_18 : f32 to vector<2x16xf32>
    %39 = arith.addf %38, %37 : vector<2x16xf32>
    %40 = arith.divf %38, %39 : vector<2x16xf32>
    %41 = arith.mulf %32, %7 : vector<2x16xf32>
    %42 = arith.mulf %26, %34 : vector<2x16xf32>
    %43 = arith.addf %41, %42 : vector<2x16xf32>
    %44 = math.tanh %43 : vector<2x16xf32>
    %45 = arith.mulf %40, %44 : vector<2x16xf32>
    %46 = vector.extract_strided_slice %10 {offsets = [0, 64], sizes = [2, 64], strides = [1, 1]} : vector<2x128xf32> to vector<2x64xf32>
    %47 = arith.addf %16, %46 : vector<2x64xf32>
    %48 = vector.broadcast %5 : vector<1x64xf32> to vector<2x64xf32>
    %49 = arith.addf %47, %48 : vector<2x64xf32>
    %50 = vector.extract_strided_slice %49 {offsets = [0, 0], sizes = [2, 16], strides = [1, 1]} : vector<2x64xf32> to vector<2x16xf32>
    %51 = arith.negf %50 : vector<2x16xf32>
    %52 = math.exp %51 : vector<2x16xf32>
    %cst_19 = arith.constant 1.000000e+00 : f32
    %53 = vector.broadcast %cst_19 : f32 to vector<2x16xf32>
    %54 = arith.addf %53, %52 : vector<2x16xf32>
    %55 = arith.divf %53, %54 : vector<2x16xf32>
    %56 = vector.extract_strided_slice %49 {offsets = [0, 16], sizes = [2, 16], strides = [1, 1]} : vector<2x64xf32> to vector<2x16xf32>
    %57 = arith.negf %56 : vector<2x16xf32>
    %58 = math.exp %57 : vector<2x16xf32>
    %cst_20 = arith.constant 1.000000e+00 : f32
    %59 = vector.broadcast %cst_20 : f32 to vector<2x16xf32>
    %60 = arith.addf %59, %58 : vector<2x16xf32>
    %61 = arith.divf %59, %60 : vector<2x16xf32>
    %62 = vector.extract_strided_slice %49 {offsets = [0, 32], sizes = [2, 16], strides = [1, 1]} : vector<2x64xf32> to vector<2x16xf32>
    %63 = math.tanh %62 : vector<2x16xf32>
    %64 = vector.extract_strided_slice %49 {offsets = [0, 48], sizes = [2, 16], strides = [1, 1]} : vector<2x64xf32> to vector<2x16xf32>
    %65 = arith.negf %64 : vector<2x16xf32>
    %66 = math.exp %65 : vector<2x16xf32>
    %cst_21 = arith.constant 1.000000e+00 : f32
    %67 = vector.broadcast %cst_21 : f32 to vector<2x16xf32>
    %68 = arith.addf %67, %66 : vector<2x16xf32>
    %69 = arith.divf %67, %68 : vector<2x16xf32>
    %70 = arith.mulf %61, %7 : vector<2x16xf32>
    %71 = arith.mulf %55, %63 : vector<2x16xf32>
    %72 = arith.addf %70, %71 : vector<2x16xf32>
    %73 = math.tanh %72 : vector<2x16xf32>
    %74 = arith.mulf %69, %73 : vector<2x16xf32>
    %c2_i32_22 = arith.constant 2 : i32
    %75 = arith.muli %c0_i32, %c2_i32_22 : i32
    %76 = arith.index_cast %75 : i32 to index
    %c0_23 = arith.constant 0 : index
    %77 = vector.load %arg8[%76, %c0_23] : memref<16x32xf32, #tpu.memory_space<vmem>>, vector<2x16xf32>
    tpu.vector_store %arg8[%76, %c0_23], %45 {strides = array<i32>} : memref<16x32xf32, #tpu.memory_space<vmem>>, vector<2x16xf32>,
    %c2_i32_24 = arith.constant 2 : i32
    %78 = arith.muli %8, %c2_i32_24 : i32
    %79 = arith.index_cast %78 : i32 to index
    %c16 = arith.constant 16 : index
    %80 = vector.load %arg8[%79, %c16] : memref<16x32xf32, #tpu.memory_space<vmem>>, vector<2x16xf32>
    tpu.vector_store %arg8[%79, %c16], %74 {strides = array<i32>} : memref<16x32xf32, #tpu.memory_space<vmem>>, vector<2x16xf32>,
    %81 = tpu.concatenate %45, %74 in 1 : vector<2x16xf32>, vector<2x16xf32> -> vector<2x32xf32>
    %c1_i32 = arith.constant 1 : i32
    %c7_i32_25 = arith.constant 7 : i32
    %82 = arith.subi %c7_i32_25, %c1_i32 : i32
    %c0_26 = arith.constant 0 : index
    %c0_27 = arith.constant 0 : index
    %83 = vector.load %arg3[%c0_26, %c0_27] : memref<32x128xf32, #tpu.memory_space<vmem>>, vector<32x128xf32>
    %cst_28 = arith.constant dense<0.000000e+00> : vector<2x128xf32>
    %84 = tpu.matmul %81, %83, %cst_28 {dimension_numbers = #tpu.dot_dimension_numbers<[1], [0], [0], [1], [0, 0, 1, 1], [], []>} : vector<2x32xf32>, vector<32x128xf32>, vector<2x128xf32> -> vector<2x128xf32>
    %c2_i32_29 = arith.constant 2 : i32
    %85 = arith.muli %c1_i32, %c2_i32_29 : i32
    %86 = arith.index_cast %85 : i32 to index
    %c0_30 = arith.constant 0 : index
    %87 = vector.load %arg7[%86, %c0_30] : memref<16x128xf32, #tpu.memory_space<vmem>>, vector<2x64xf32>
    %c2_i32_31 = arith.constant 2 : i32
    %88 = arith.muli %82, %c2_i32_31 : i32
    %89 = arith.index_cast %88 : i32 to index
    %c64_32 = arith.constant 64 : index
    %90 = vector.load %arg7[%89, %c64_32] : memref<16x128xf32, #tpu.memory_space<vmem>>, vector<2x64xf32>
    %91 = vector.extract_strided_slice %84 {offsets = [0, 0], sizes = [2, 64], strides = [1, 1]} : vector<2x128xf32> to vector<2x64xf32>
    %92 = arith.addf %87, %91 : vector<2x64xf32>
    %93 = vector.broadcast %4 : vector<1x64xf32> to vector<2x64xf32>
    %94 = arith.addf %92, %93 : vector<2x64xf32>
    %95 = vector.extract_strided_slice %94 {offsets = [0, 0], sizes = [2, 16], strides = [1, 1]} : vector<2x64xf32> to vector<2x16xf32>
    %96 = arith.negf %95 : vector<2x16xf32>
    %97 = math.exp %96 : vector<2x16xf32>
    %cst_33 = arith.constant 1.000000e+00 : f32
    %98 = vector.broadcast %cst_33 : f32 to vector<2x16xf32>
    %99 = arith.addf %98, %97 : vector<2x16xf32>
    %100 = arith.divf %98, %99 : vector<2x16xf32>
    %101 = vector.extract_strided_slice %94 {offsets = [0, 16], sizes = [2, 16], strides = [1, 1]} : vector<2x64xf32> to vector<2x16xf32>
    %102 = arith.negf %101 : vector<2x16xf32>
    %103 = math.exp %102 : vector<2x16xf32>
    %cst_34 = arith.constant 1.000000e+00 : f32
    %104 = vector.broadcast %cst_34 : f32 to vector<2x16xf32>
    %105 = arith.addf %104, %103 : vector<2x16xf32>
    %106 = arith.divf %104, %105 : vector<2x16xf32>
    %107 = vector.extract_strided_slice %94 {offsets = [0, 32], sizes = [2, 16], strides = [1, 1]} : vector<2x64xf32> to vector<2x16xf32>
    %108 = math.tanh %107 : vector<2x16xf32>
    %109 = vector.extract_strided_slice %94 {offsets = [0, 48], sizes = [2, 16], strides = [1, 1]} : vector<2x64xf32> to vector<2x16xf32>
    %110 = arith.negf %109 : vector<2x16xf32>
    %111 = math.exp %110 : vector<2x16xf32>
    %cst_35 = arith.constant 1.000000e+00 : f32
    %112 = vector.broadcast %cst_35 : f32 to vector<2x16xf32>
    %113 = arith.addf %112, %111 : vector<2x16xf32>
    %114 = arith.divf %112, %113 : vector<2x16xf32>
    %115 = arith.mulf %106, %43 : vector<2x16xf32>
    %116 = arith.mulf %100, %108 : vector<2x16xf32>
    %117 = arith.addf %115, %116 : vector<2x16xf32>
    %118 = math.tanh %117 : vector<2x16xf32>
    %119 = arith.mulf %114, %118 : vector<2x16xf32>
    %120 = vector.extract_strided_slice %84 {offsets = [0, 64], sizes = [2, 64], strides = [1, 1]} : vector<2x128xf32> to vector<2x64xf32>
    %121 = arith.addf %90, %120 : vector<2x64xf32>
    %122 = vector.broadcast %5 : vector<1x64xf32> to vector<2x64xf32>
    %123 = arith.addf %121, %122 : vector<2x64xf32>
    %124 = vector.extract_strided_slice %123 {offsets = [0, 0], sizes = [2, 16], strides = [1, 1]} : vector<2x64xf32> to vector<2x16xf32>
    %125 = arith.negf %124 : vector<2x16xf32>
    %126 = math.exp %125 : vector<2x16xf32>
    %cst_36 = arith.constant 1.000000e+00 : f32
    %127 = vector.broadcast %cst_36 : f32 to vector<2x16xf32>
    %128 = arith.addf %127, %126 : vector<2x16xf32>
    %129 = arith.divf %127, %128 : vector<2x16xf32>
    %130 = vector.extract_strided_slice %123 {offsets = [0, 16], sizes = [2, 16], strides = [1, 1]} : vector<2x64xf32> to vector<2x16xf32>
    %131 = arith.negf %130 : vector<2x16xf32>
    %132 = math.exp %131 : vector<2x16xf32>
    %cst_37 = arith.constant 1.000000e+00 : f32
    %133 = vector.broadcast %cst_37 : f32 to vector<2x16xf32>
    %134 = arith.addf %133, %132 : vector<2x16xf32>
    %135 = arith.divf %133, %134 : vector<2x16xf32>
    %136 = vector.extract_strided_slice %123 {offsets = [0, 32], sizes = [2, 16], strides = [1, 1]} : vector<2x64xf32> to vector<2x16xf32>
    %137 = math.tanh %136 : vector<2x16xf32>
    %138 = vector.extract_strided_slice %123 {offsets = [0, 48], sizes = [2, 16], strides = [1, 1]} : vector<2x64xf32> to vector<2x16xf32>
    %139 = arith.negf %138 : vector<2x16xf32>
    %140 = math.exp %139 : vector<2x16xf32>
    %cst_38 = arith.constant 1.000000e+00 : f32
    %141 = vector.broadcast %cst_38 : f32 to vector<2x16xf32>
    %142 = arith.addf %141, %140 : vector<2x16xf32>
    %143 = arith.divf %141, %142 : vector<2x16xf32>
    %144 = arith.mulf %135, %72 : vector<2x16xf32>
    %145 = arith.mulf %129, %137 : vector<2x16xf32>
    %146 = arith.addf %144, %145 : vector<2x16xf32>
    %147 = math.tanh %146 : vector<2x16xf32>
    %148 = arith.mulf %143, %147 : vector<2x16xf32>
    %c2_i32_39 = arith.constant 2 : i32
    %149 = arith.muli %c1_i32, %c2_i32_39 : i32
    %150 = arith.index_cast %149 : i32 to index
    %c0_40 = arith.constant 0 : index
    %151 = vector.load %arg8[%150, %c0_40] : memref<16x32xf32, #tpu.memory_space<vmem>>, vector<2x16xf32>
    tpu.vector_store %arg8[%150, %c0_40], %119 {strides = array<i32>} : memref<16x32xf32, #tpu.memory_space<vmem>>, vector<2x16xf32>,
    %c2_i32_41 = arith.constant 2 : i32
    %152 = arith.muli %82, %c2_i32_41 : i32
    %153 = arith.index_cast %152 : i32 to index
    %c16_42 = arith.constant 16 : index
    %154 = vector.load %arg8[%153, %c16_42] : memref<16x32xf32, #tpu.memory_space<vmem>>, vector<2x16xf32>
    tpu.vector_store %arg8[%153, %c16_42], %148 {strides = array<i32>} : memref<16x32xf32, #tpu.memory_space<vmem>>, vector<2x16xf32>,
    %155 = tpu.concatenate %119, %148 in 1 : vector<2x16xf32>, vector<2x16xf32> -> vector<2x32xf32>
    %c2_i32_43 = arith.constant 2 : i32
    %c7_i32_44 = arith.constant 7 : i32
    %156 = arith.subi %c7_i32_44, %c2_i32_43 : i32
    %c0_45 = arith.constant 0 : index
    %c0_46 = arith.constant 0 : index
    %157 = vector.load %arg3[%c0_45, %c0_46] : memref<32x128xf32, #tpu.memory_space<vmem>>, vector<32x128xf32>
    %cst_47 = arith.constant dense<0.000000e+00> : vector<2x128xf32>
    %158 = tpu.matmul %155, %157, %cst_47 {dimension_numbers = #tpu.dot_dimension_numbers<[1], [0], [0], [1], [0, 0, 1, 1], [], []>} : vector<2x32xf32>, vector<32x128xf32>, vector<2x128xf32> -> vector<2x128xf32>
    %c2_i32_48 = arith.constant 2 : i32
    %159 = arith.muli %c2_i32_43, %c2_i32_48 : i32
    %160 = arith.index_cast %159 : i32 to index
    %c0_49 = arith.constant 0 : index
    %161 = vector.load %arg7[%160, %c0_49] : memref<16x128xf32, #tpu.memory_space<vmem>>, vector<2x64xf32>
    %c2_i32_50 = arith.constant 2 : i32
    %162 = arith.muli %156, %c2_i32_50 : i32
    %163 = arith.index_cast %162 : i32 to index
    %c64_51 = arith.constant 64 : index
    %164 = vector.load %arg7[%163, %c64_51] : memref<16x128xf32, #tpu.memory_space<vmem>>, vector<2x64xf32>
    %165 = vector.extract_strided_slice %158 {offsets = [0, 0], sizes = [2, 64], strides = [1, 1]} : vector<2x128xf32> to vector<2x64xf32>
    %166 = arith.addf %161, %165 : vector<2x64xf32>
    %167 = vector.broadcast %4 : vector<1x64xf32> to vector<2x64xf32>
    %168 = arith.addf %166, %167 : vector<2x64xf32>
    %169 = vector.extract_strided_slice %168 {offsets = [0, 0], sizes = [2, 16], strides = [1, 1]} : vector<2x64xf32> to vector<2x16xf32>
    %170 = arith.negf %169 : vector<2x16xf32>
    %171 = math.exp %170 : vector<2x16xf32>
    %cst_52 = arith.constant 1.000000e+00 : f32
    %172 = vector.broadcast %cst_52 : f32 to vector<2x16xf32>
    %173 = arith.addf %172, %171 : vector<2x16xf32>
    %174 = arith.divf %172, %173 : vector<2x16xf32>
    %175 = vector.extract_strided_slice %168 {offsets = [0, 16], sizes = [2, 16], strides = [1, 1]} : vector<2x64xf32> to vector<2x16xf32>
    %176 = arith.negf %175 : vector<2x16xf32>
    %177 = math.exp %176 : vector<2x16xf32>
    %cst_53 = arith.constant 1.000000e+00 : f32
    %178 = vector.broadcast %cst_53 : f32 to vector<2x16xf32>
    %179 = arith.addf %178, %177 : vector<2x16xf32>
    %180 = arith.divf %178, %179 : vector<2x16xf32>
    %181 = vector.extract_strided_slice %168 {offsets = [0, 32], sizes = [2, 16], strides = [1, 1]} : vector<2x64xf32> to vector<2x16xf32>
    %182 = math.tanh %181 : vector<2x16xf32>
    %183 = vector.extract_strided_slice %168 {offsets = [0, 48], sizes = [2, 16], strides = [1, 1]} : vector<2x64xf32> to vector<2x16xf32>
    %184 = arith.negf %183 : vector<2x16xf32>
    %185 = math.exp %184 : vector<2x16xf32>
    %cst_54 = arith.constant 1.000000e+00 : f32
    %186 = vector.broadcast %cst_54 : f32 to vector<2x16xf32>
    %187 = arith.addf %186, %185 : vector<2x16xf32>
    %188 = arith.divf %186, %187 : vector<2x16xf32>
    %189 = arith.mulf %180, %117 : vector<2x16xf32>
    %190 = arith.mulf %174, %182 : vector<2x16xf32>
    %191 = arith.addf %189, %190 : vector<2x16xf32>
    %192 = math.tanh %191 : vector<2x16xf32>
    %193 = arith.mulf %188, %192 : vector<2x16xf32>
    %194 = vector.extract_strided_slice %158 {offsets = [0, 64], sizes = [2, 64], strides = [1, 1]} : vector<2x128xf32> to vector<2x64xf32>
    %195 = arith.addf %164, %194 : vector<2x64xf32>
    %196 = vector.broadcast %5 : vector<1x64xf32> to vector<2x64xf32>
    %197 = arith.addf %195, %196 : vector<2x64xf32>
    %198 = vector.extract_strided_slice %197 {offsets = [0, 0], sizes = [2, 16], strides = [1, 1]} : vector<2x64xf32> to vector<2x16xf32>
    %199 = arith.negf %198 : vector<2x16xf32>
    %200 = math.exp %199 : vector<2x16xf32>
    %cst_55 = arith.constant 1.000000e+00 : f32
    %201 = vector.broadcast %cst_55 : f32 to vector<2x16xf32>
    %202 = arith.addf %201, %200 : vector<2x16xf32>
    %203 = arith.divf %201, %202 : vector<2x16xf32>
    %204 = vector.extract_strided_slice %197 {offsets = [0, 16], sizes = [2, 16], strides = [1, 1]} : vector<2x64xf32> to vector<2x16xf32>
    %205 = arith.negf %204 : vector<2x16xf32>
    %206 = math.exp %205 : vector<2x16xf32>
    %cst_56 = arith.constant 1.000000e+00 : f32
    %207 = vector.broadcast %cst_56 : f32 to vector<2x16xf32>
    %208 = arith.addf %207, %206 : vector<2x16xf32>
    %209 = arith.divf %207, %208 : vector<2x16xf32>
    %210 = vector.extract_strided_slice %197 {offsets = [0, 32], sizes = [2, 16], strides = [1, 1]} : vector<2x64xf32> to vector<2x16xf32>
    %211 = math.tanh %210 : vector<2x16xf32>
    %212 = vector.extract_strided_slice %197 {offsets = [0, 48], sizes = [2, 16], strides = [1, 1]} : vector<2x64xf32> to vector<2x16xf32>
    %213 = arith.negf %212 : vector<2x16xf32>
    %214 = math.exp %213 : vector<2x16xf32>
    %cst_57 = arith.constant 1.000000e+00 : f32
    %215 = vector.broadcast %cst_57 : f32 to vector<2x16xf32>
    %216 = arith.addf %215, %214 : vector<2x16xf32>
    %217 = arith.divf %215, %216 : vector<2x16xf32>
    %218 = arith.mulf %209, %146 : vector<2x16xf32>
    %219 = arith.mulf %203, %211 : vector<2x16xf32>
    %220 = arith.addf %218, %219 : vector<2x16xf32>
    %221 = math.tanh %220 : vector<2x16xf32>
    %222 = arith.mulf %217, %221 : vector<2x16xf32>
    %c2_i32_58 = arith.constant 2 : i32
    %223 = arith.muli %c2_i32_43, %c2_i32_58 : i32
    %224 = arith.index_cast %223 : i32 to index
    %c0_59 = arith.constant 0 : index
    %225 = vector.load %arg8[%224, %c0_59] : memref<16x32xf32, #tpu.memory_space<vmem>>, vector<2x16xf32>
    tpu.vector_store %arg8[%224, %c0_59], %193 {strides = array<i32>} : memref<16x32xf32, #tpu.memory_space<vmem>>, vector<2x16xf32>,
    %c2_i32_60 = arith.constant 2 : i32
    %226 = arith.muli %156, %c2_i32_60 : i32
    %227 = arith.index_cast %226 : i32 to index
    %c16_61 = arith.constant 16 : index
    %228 = vector.load %arg8[%227, %c16_61] : memref<16x32xf32, #tpu.memory_space<vmem>>, vector<2x16xf32>
    tpu.vector_store %arg8[%227, %c16_61], %222 {strides = array<i32>} : memref<16x32xf32, #tpu.memory_space<vmem>>, vector<2x16xf32>,
    %229 = tpu.concatenate %193, %222 in 1 : vector<2x16xf32>, vector<2x16xf32> -> vector<2x32xf32>
    %c3_i32 = arith.constant 3 : i32
    %c7_i32_62 = arith.constant 7 : i32
    %230 = arith.subi %c7_i32_62, %c3_i32 : i32
    %c0_63 = arith.constant 0 : index
    %c0_64 = arith.constant 0 : index
    %231 = vector.load %arg3[%c0_63, %c0_64] : memref<32x128xf32, #tpu.memory_space<vmem>>, vector<32x128xf32>
    %cst_65 = arith.constant dense<0.000000e+00> : vector<2x128xf32>
    %232 = tpu.matmul %229, %231, %cst_65 {dimension_numbers = #tpu.dot_dimension_numbers<[1], [0], [0], [1], [0, 0, 1, 1], [], []>} : vector<2x32xf32>, vector<32x128xf32>, vector<2x128xf32> -> vector<2x128xf32>
    %c2_i32_66 = arith.constant 2 : i32
    %233 = arith.muli %c3_i32, %c2_i32_66 : i32
    %234 = arith.index_cast %233 : i32 to index
    %c0_67 = arith.constant 0 : index
    %235 = vector.load %arg7[%234, %c0_67] : memref<16x128xf32, #tpu.memory_space<vmem>>, vector<2x64xf32>
    %c2_i32_68 = arith.constant 2 : i32
    %236 = arith.muli %230, %c2_i32_68 : i32
    %237 = arith.index_cast %236 : i32 to index
    %c64_69 = arith.constant 64 : index
    %238 = vector.load %arg7[%237, %c64_69] : memref<16x128xf32, #tpu.memory_space<vmem>>, vector<2x64xf32>
    %239 = vector.extract_strided_slice %232 {offsets = [0, 0], sizes = [2, 64], strides = [1, 1]} : vector<2x128xf32> to vector<2x64xf32>
    %240 = arith.addf %235, %239 : vector<2x64xf32>
    %241 = vector.broadcast %4 : vector<1x64xf32> to vector<2x64xf32>
    %242 = arith.addf %240, %241 : vector<2x64xf32>
    %243 = vector.extract_strided_slice %242 {offsets = [0, 0], sizes = [2, 16], strides = [1, 1]} : vector<2x64xf32> to vector<2x16xf32>
    %244 = arith.negf %243 : vector<2x16xf32>
    %245 = math.exp %244 : vector<2x16xf32>
    %cst_70 = arith.constant 1.000000e+00 : f32
    %246 = vector.broadcast %cst_70 : f32 to vector<2x16xf32>
    %247 = arith.addf %246, %245 : vector<2x16xf32>
    %248 = arith.divf %246, %247 : vector<2x16xf32>
    %249 = vector.extract_strided_slice %242 {offsets = [0, 16], sizes = [2, 16], strides = [1, 1]} : vector<2x64xf32> to vector<2x16xf32>
    %250 = arith.negf %249 : vector<2x16xf32>
    %251 = math.exp %250 : vector<2x16xf32>
    %cst_71 = arith.constant 1.000000e+00 : f32
    %252 = vector.broadcast %cst_71 : f32 to vector<2x16xf32>
    %253 = arith.addf %252, %251 : vector<2x16xf32>
    %254 = arith.divf %252, %253 : vector<2x16xf32>
    %255 = vector.extract_strided_slice %242 {offsets = [0, 32], sizes = [2, 16], strides = [1, 1]} : vector<2x64xf32> to vector<2x16xf32>
    %256 = math.tanh %255 : vector<2x16xf32>
    %257 = vector.extract_strided_slice %242 {offsets = [0, 48], sizes = [2, 16], strides = [1, 1]} : vector<2x64xf32> to vector<2x16xf32>
    %258 = arith.negf %257 : vector<2x16xf32>
    %259 = math.exp %258 : vector<2x16xf32>
    %cst_72 = arith.constant 1.000000e+00 : f32
    %260 = vector.broadcast %cst_72 : f32 to vector<2x16xf32>
    %261 = arith.addf %260, %259 : vector<2x16xf32>
    %262 = arith.divf %260, %261 : vector<2x16xf32>
    %263 = arith.mulf %254, %191 : vector<2x16xf32>
    %264 = arith.mulf %248, %256 : vector<2x16xf32>
    %265 = arith.addf %263, %264 : vector<2x16xf32>
    %266 = math.tanh %265 : vector<2x16xf32>
    %267 = arith.mulf %262, %266 : vector<2x16xf32>
    %268 = vector.extract_strided_slice %232 {offsets = [0, 64], sizes = [2, 64], strides = [1, 1]} : vector<2x128xf32> to vector<2x64xf32>
    %269 = arith.addf %238, %268 : vector<2x64xf32>
    %270 = vector.broadcast %5 : vector<1x64xf32> to vector<2x64xf32>
    %271 = arith.addf %269, %270 : vector<2x64xf32>
    %272 = vector.extract_strided_slice %271 {offsets = [0, 0], sizes = [2, 16], strides = [1, 1]} : vector<2x64xf32> to vector<2x16xf32>
    %273 = arith.negf %272 : vector<2x16xf32>
    %274 = math.exp %273 : vector<2x16xf32>
    %cst_73 = arith.constant 1.000000e+00 : f32
    %275 = vector.broadcast %cst_73 : f32 to vector<2x16xf32>
    %276 = arith.addf %275, %274 : vector<2x16xf32>
    %277 = arith.divf %275, %276 : vector<2x16xf32>
    %278 = vector.extract_strided_slice %271 {offsets = [0, 16], sizes = [2, 16], strides = [1, 1]} : vector<2x64xf32> to vector<2x16xf32>
    %279 = arith.negf %278 : vector<2x16xf32>
    %280 = math.exp %279 : vector<2x16xf32>
    %cst_74 = arith.constant 1.000000e+00 : f32
    %281 = vector.broadcast %cst_74 : f32 to vector<2x16xf32>
    %282 = arith.addf %281, %280 : vector<2x16xf32>
    %283 = arith.divf %281, %282 : vector<2x16xf32>
    %284 = vector.extract_strided_slice %271 {offsets = [0, 32], sizes = [2, 16], strides = [1, 1]} : vector<2x64xf32> to vector<2x16xf32>
    %285 = math.tanh %284 : vector<2x16xf32>
    %286 = vector.extract_strided_slice %271 {offsets = [0, 48], sizes = [2, 16], strides = [1, 1]} : vector<2x64xf32> to vector<2x16xf32>
    %287 = arith.negf %286 : vector<2x16xf32>
    %288 = math.exp %287 : vector<2x16xf32>
    %cst_75 = arith.constant 1.000000e+00 : f32
    %289 = vector.broadcast %cst_75 : f32 to vector<2x16xf32>
    %290 = arith.addf %289, %288 : vector<2x16xf32>
    %291 = arith.divf %289, %290 : vector<2x16xf32>
    %292 = arith.mulf %283, %220 : vector<2x16xf32>
    %293 = arith.mulf %277, %285 : vector<2x16xf32>
    %294 = arith.addf %292, %293 : vector<2x16xf32>
    %295 = math.tanh %294 : vector<2x16xf32>
    %296 = arith.mulf %291, %295 : vector<2x16xf32>
    %c2_i32_76 = arith.constant 2 : i32
    %297 = arith.muli %c3_i32, %c2_i32_76 : i32
    %298 = arith.index_cast %297 : i32 to index
    %c0_77 = arith.constant 0 : index
    %299 = vector.load %arg8[%298, %c0_77] : memref<16x32xf32, #tpu.memory_space<vmem>>, vector<2x16xf32>
    tpu.vector_store %arg8[%298, %c0_77], %267 {strides = array<i32>} : memref<16x32xf32, #tpu.memory_space<vmem>>, vector<2x16xf32>,
    %c2_i32_78 = arith.constant 2 : i32
    %300 = arith.muli %230, %c2_i32_78 : i32
    %301 = arith.index_cast %300 : i32 to index
    %c16_79 = arith.constant 16 : index
    %302 = vector.load %arg8[%301, %c16_79] : memref<16x32xf32, #tpu.memory_space<vmem>>, vector<2x16xf32>
    tpu.vector_store %arg8[%301, %c16_79], %296 {strides = array<i32>} : memref<16x32xf32, #tpu.memory_space<vmem>>, vector<2x16xf32>,
    %303 = tpu.concatenate %267, %296 in 1 : vector<2x16xf32>, vector<2x16xf32> -> vector<2x32xf32>
    %c4_i32 = arith.constant 4 : i32
    %c7_i32_80 = arith.constant 7 : i32
    %304 = arith.subi %c7_i32_80, %c4_i32 : i32
    %c0_81 = arith.constant 0 : index
    %c0_82 = arith.constant 0 : index
    %305 = vector.load %arg3[%c0_81, %c0_82] : memref<32x128xf32, #tpu.memory_space<vmem>>, vector<32x128xf32>
    %cst_83 = arith.constant dense<0.000000e+00> : vector<2x128xf32>
    %306 = tpu.matmul %303, %305, %cst_83 {dimension_numbers = #tpu.dot_dimension_numbers<[1], [0], [0], [1], [0, 0, 1, 1], [], []>} : vector<2x32xf32>, vector<32x128xf32>, vector<2x128xf32> -> vector<2x128xf32>
    %c2_i32_84 = arith.constant 2 : i32
    %307 = arith.muli %c4_i32, %c2_i32_84 : i32
    %308 = arith.index_cast %307 : i32 to index
    %c0_85 = arith.constant 0 : index
    %309 = vector.load %arg7[%308, %c0_85] : memref<16x128xf32, #tpu.memory_space<vmem>>, vector<2x64xf32>
    %c2_i32_86 = arith.constant 2 : i32
    %310 = arith.muli %304, %c2_i32_86 : i32
    %311 = arith.index_cast %310 : i32 to index
    %c64_87 = arith.constant 64 : index
    %312 = vector.load %arg7[%311, %c64_87] : memref<16x128xf32, #tpu.memory_space<vmem>>, vector<2x64xf32>
    %313 = vector.extract_strided_slice %306 {offsets = [0, 0], sizes = [2, 64], strides = [1, 1]} : vector<2x128xf32> to vector<2x64xf32>
    %314 = arith.addf %309, %313 : vector<2x64xf32>
    %315 = vector.broadcast %4 : vector<1x64xf32> to vector<2x64xf32>
    %316 = arith.addf %314, %315 : vector<2x64xf32>
    %317 = vector.extract_strided_slice %316 {offsets = [0, 0], sizes = [2, 16], strides = [1, 1]} : vector<2x64xf32> to vector<2x16xf32>
    %318 = arith.negf %317 : vector<2x16xf32>
    %319 = math.exp %318 : vector<2x16xf32>
    %cst_88 = arith.constant 1.000000e+00 : f32
    %320 = vector.broadcast %cst_88 : f32 to vector<2x16xf32>
    %321 = arith.addf %320, %319 : vector<2x16xf32>
    %322 = arith.divf %320, %321 : vector<2x16xf32>
    %323 = vector.extract_strided_slice %316 {offsets = [0, 16], sizes = [2, 16], strides = [1, 1]} : vector<2x64xf32> to vector<2x16xf32>
    %324 = arith.negf %323 : vector<2x16xf32>
    %325 = math.exp %324 : vector<2x16xf32>
    %cst_89 = arith.constant 1.000000e+00 : f32
    %326 = vector.broadcast %cst_89 : f32 to vector<2x16xf32>
    %327 = arith.addf %326, %325 : vector<2x16xf32>
    %328 = arith.divf %326, %327 : vector<2x16xf32>
    %329 = vector.extract_strided_slice %316 {offsets = [0, 32], sizes = [2, 16], strides = [1, 1]} : vector<2x64xf32> to vector<2x16xf32>
    %330 = math.tanh %329 : vector<2x16xf32>
    %331 = vector.extract_strided_slice %316 {offsets = [0, 48], sizes = [2, 16], strides = [1, 1]} : vector<2x64xf32> to vector<2x16xf32>
    %332 = arith.negf %331 : vector<2x16xf32>
    %333 = math.exp %332 : vector<2x16xf32>
    %cst_90 = arith.constant 1.000000e+00 : f32
    %334 = vector.broadcast %cst_90 : f32 to vector<2x16xf32>
    %335 = arith.addf %334, %333 : vector<2x16xf32>
    %336 = arith.divf %334, %335 : vector<2x16xf32>
    %337 = arith.mulf %328, %265 : vector<2x16xf32>
    %338 = arith.mulf %322, %330 : vector<2x16xf32>
    %339 = arith.addf %337, %338 : vector<2x16xf32>
    %340 = math.tanh %339 : vector<2x16xf32>
    %341 = arith.mulf %336, %340 : vector<2x16xf32>
    %342 = vector.extract_strided_slice %306 {offsets = [0, 64], sizes = [2, 64], strides = [1, 1]} : vector<2x128xf32> to vector<2x64xf32>
    %343 = arith.addf %312, %342 : vector<2x64xf32>
    %344 = vector.broadcast %5 : vector<1x64xf32> to vector<2x64xf32>
    %345 = arith.addf %343, %344 : vector<2x64xf32>
    %346 = vector.extract_strided_slice %345 {offsets = [0, 0], sizes = [2, 16], strides = [1, 1]} : vector<2x64xf32> to vector<2x16xf32>
    %347 = arith.negf %346 : vector<2x16xf32>
    %348 = math.exp %347 : vector<2x16xf32>
    %cst_91 = arith.constant 1.000000e+00 : f32
    %349 = vector.broadcast %cst_91 : f32 to vector<2x16xf32>
    %350 = arith.addf %349, %348 : vector<2x16xf32>
    %351 = arith.divf %349, %350 : vector<2x16xf32>
    %352 = vector.extract_strided_slice %345 {offsets = [0, 16], sizes = [2, 16], strides = [1, 1]} : vector<2x64xf32> to vector<2x16xf32>
    %353 = arith.negf %352 : vector<2x16xf32>
    %354 = math.exp %353 : vector<2x16xf32>
    %cst_92 = arith.constant 1.000000e+00 : f32
    %355 = vector.broadcast %cst_92 : f32 to vector<2x16xf32>
    %356 = arith.addf %355, %354 : vector<2x16xf32>
    %357 = arith.divf %355, %356 : vector<2x16xf32>
    %358 = vector.extract_strided_slice %345 {offsets = [0, 32], sizes = [2, 16], strides = [1, 1]} : vector<2x64xf32> to vector<2x16xf32>
    %359 = math.tanh %358 : vector<2x16xf32>
    %360 = vector.extract_strided_slice %345 {offsets = [0, 48], sizes = [2, 16], strides = [1, 1]} : vector<2x64xf32> to vector<2x16xf32>
    %361 = arith.negf %360 : vector<2x16xf32>
    %362 = math.exp %361 : vector<2x16xf32>
    %cst_93 = arith.constant 1.000000e+00 : f32
    %363 = vector.broadcast %cst_93 : f32 to vector<2x16xf32>
    %364 = arith.addf %363, %362 : vector<2x16xf32>
    %365 = arith.divf %363, %364 : vector<2x16xf32>
    %366 = arith.mulf %357, %294 : vector<2x16xf32>
    %367 = arith.mulf %351, %359 : vector<2x16xf32>
    %368 = arith.addf %366, %367 : vector<2x16xf32>
    %369 = math.tanh %368 : vector<2x16xf32>
    %370 = arith.mulf %365, %369 : vector<2x16xf32>
    %c2_i32_94 = arith.constant 2 : i32
    %371 = arith.muli %c4_i32, %c2_i32_94 : i32
    %372 = arith.index_cast %371 : i32 to index
    %c0_95 = arith.constant 0 : index
    %373 = vector.load %arg8[%372, %c0_95] : memref<16x32xf32, #tpu.memory_space<vmem>>, vector<2x16xf32>
    tpu.vector_store %arg8[%372, %c0_95], %341 {strides = array<i32>} : memref<16x32xf32, #tpu.memory_space<vmem>>, vector<2x16xf32>,
    %c2_i32_96 = arith.constant 2 : i32
    %374 = arith.muli %304, %c2_i32_96 : i32
    %375 = arith.index_cast %374 : i32 to index
    %c16_97 = arith.constant 16 : index
    %376 = vector.load %arg8[%375, %c16_97] : memref<16x32xf32, #tpu.memory_space<vmem>>, vector<2x16xf32>
    tpu.vector_store %arg8[%375, %c16_97], %370 {strides = array<i32>} : memref<16x32xf32, #tpu.memory_space<vmem>>, vector<2x16xf32>,
    %377 = tpu.concatenate %341, %370 in 1 : vector<2x16xf32>, vector<2x16xf32> -> vector<2x32xf32>
    %c5_i32 = arith.constant 5 : i32
    %c7_i32_98 = arith.constant 7 : i32
    %378 = arith.subi %c7_i32_98, %c5_i32 : i32
    %c0_99 = arith.constant 0 : index
    %c0_100 = arith.constant 0 : index
    %379 = vector.load %arg3[%c0_99, %c0_100] : memref<32x128xf32, #tpu.memory_space<vmem>>, vector<32x128xf32>
    %cst_101 = arith.constant dense<0.000000e+00> : vector<2x128xf32>
    %380 = tpu.matmul %377, %379, %cst_101 {dimension_numbers = #tpu.dot_dimension_numbers<[1], [0], [0], [1], [0, 0, 1, 1], [], []>} : vector<2x32xf32>, vector<32x128xf32>, vector<2x128xf32> -> vector<2x128xf32>
    %c2_i32_102 = arith.constant 2 : i32
    %381 = arith.muli %c5_i32, %c2_i32_102 : i32
    %382 = arith.index_cast %381 : i32 to index
    %c0_103 = arith.constant 0 : index
    %383 = vector.load %arg7[%382, %c0_103] : memref<16x128xf32, #tpu.memory_space<vmem>>, vector<2x64xf32>
    %c2_i32_104 = arith.constant 2 : i32
    %384 = arith.muli %378, %c2_i32_104 : i32
    %385 = arith.index_cast %384 : i32 to index
    %c64_105 = arith.constant 64 : index
    %386 = vector.load %arg7[%385, %c64_105] : memref<16x128xf32, #tpu.memory_space<vmem>>, vector<2x64xf32>
    %387 = vector.extract_strided_slice %380 {offsets = [0, 0], sizes = [2, 64], strides = [1, 1]} : vector<2x128xf32> to vector<2x64xf32>
    %388 = arith.addf %383, %387 : vector<2x64xf32>
    %389 = vector.broadcast %4 : vector<1x64xf32> to vector<2x64xf32>
    %390 = arith.addf %388, %389 : vector<2x64xf32>
    %391 = vector.extract_strided_slice %390 {offsets = [0, 0], sizes = [2, 16], strides = [1, 1]} : vector<2x64xf32> to vector<2x16xf32>
    %392 = arith.negf %391 : vector<2x16xf32>
    %393 = math.exp %392 : vector<2x16xf32>
    %cst_106 = arith.constant 1.000000e+00 : f32
    %394 = vector.broadcast %cst_106 : f32 to vector<2x16xf32>
    %395 = arith.addf %394, %393 : vector<2x16xf32>
    %396 = arith.divf %394, %395 : vector<2x16xf32>
    %397 = vector.extract_strided_slice %390 {offsets = [0, 16], sizes = [2, 16], strides = [1, 1]} : vector<2x64xf32> to vector<2x16xf32>
    %398 = arith.negf %397 : vector<2x16xf32>
    %399 = math.exp %398 : vector<2x16xf32>
    %cst_107 = arith.constant 1.000000e+00 : f32
    %400 = vector.broadcast %cst_107 : f32 to vector<2x16xf32>
    %401 = arith.addf %400, %399 : vector<2x16xf32>
    %402 = arith.divf %400, %401 : vector<2x16xf32>
    %403 = vector.extract_strided_slice %390 {offsets = [0, 32], sizes = [2, 16], strides = [1, 1]} : vector<2x64xf32> to vector<2x16xf32>
    %404 = math.tanh %403 : vector<2x16xf32>
    %405 = vector.extract_strided_slice %390 {offsets = [0, 48], sizes = [2, 16], strides = [1, 1]} : vector<2x64xf32> to vector<2x16xf32>
    %406 = arith.negf %405 : vector<2x16xf32>
    %407 = math.exp %406 : vector<2x16xf32>
    %cst_108 = arith.constant 1.000000e+00 : f32
    %408 = vector.broadcast %cst_108 : f32 to vector<2x16xf32>
    %409 = arith.addf %408, %407 : vector<2x16xf32>
    %410 = arith.divf %408, %409 : vector<2x16xf32>
    %411 = arith.mulf %402, %339 : vector<2x16xf32>
    %412 = arith.mulf %396, %404 : vector<2x16xf32>
    %413 = arith.addf %411, %412 : vector<2x16xf32>
    %414 = math.tanh %413 : vector<2x16xf32>
    %415 = arith.mulf %410, %414 : vector<2x16xf32>
    %416 = vector.extract_strided_slice %380 {offsets = [0, 64], sizes = [2, 64], strides = [1, 1]} : vector<2x128xf32> to vector<2x64xf32>
    %417 = arith.addf %386, %416 : vector<2x64xf32>
    %418 = vector.broadcast %5 : vector<1x64xf32> to vector<2x64xf32>
    %419 = arith.addf %417, %418 : vector<2x64xf32>
    %420 = vector.extract_strided_slice %419 {offsets = [0, 0], sizes = [2, 16], strides = [1, 1]} : vector<2x64xf32> to vector<2x16xf32>
    %421 = arith.negf %420 : vector<2x16xf32>
    %422 = math.exp %421 : vector<2x16xf32>
    %cst_109 = arith.constant 1.000000e+00 : f32
    %423 = vector.broadcast %cst_109 : f32 to vector<2x16xf32>
    %424 = arith.addf %423, %422 : vector<2x16xf32>
    %425 = arith.divf %423, %424 : vector<2x16xf32>
    %426 = vector.extract_strided_slice %419 {offsets = [0, 16], sizes = [2, 16], strides = [1, 1]} : vector<2x64xf32> to vector<2x16xf32>
    %427 = arith.negf %426 : vector<2x16xf32>
    %428 = math.exp %427 : vector<2x16xf32>
    %cst_110 = arith.constant 1.000000e+00 : f32
    %429 = vector.broadcast %cst_110 : f32 to vector<2x16xf32>
    %430 = arith.addf %429, %428 : vector<2x16xf32>
    %431 = arith.divf %429, %430 : vector<2x16xf32>
    %432 = vector.extract_strided_slice %419 {offsets = [0, 32], sizes = [2, 16], strides = [1, 1]} : vector<2x64xf32> to vector<2x16xf32>
    %433 = math.tanh %432 : vector<2x16xf32>
    %434 = vector.extract_strided_slice %419 {offsets = [0, 48], sizes = [2, 16], strides = [1, 1]} : vector<2x64xf32> to vector<2x16xf32>
    %435 = arith.negf %434 : vector<2x16xf32>
    %436 = math.exp %435 : vector<2x16xf32>
    %cst_111 = arith.constant 1.000000e+00 : f32
    %437 = vector.broadcast %cst_111 : f32 to vector<2x16xf32>
    %438 = arith.addf %437, %436 : vector<2x16xf32>
    %439 = arith.divf %437, %438 : vector<2x16xf32>
    %440 = arith.mulf %431, %368 : vector<2x16xf32>
    %441 = arith.mulf %425, %433 : vector<2x16xf32>
    %442 = arith.addf %440, %441 : vector<2x16xf32>
    %443 = math.tanh %442 : vector<2x16xf32>
    %444 = arith.mulf %439, %443 : vector<2x16xf32>
    %c2_i32_112 = arith.constant 2 : i32
    %445 = arith.muli %c5_i32, %c2_i32_112 : i32
    %446 = arith.index_cast %445 : i32 to index
    %c0_113 = arith.constant 0 : index
    %447 = vector.load %arg8[%446, %c0_113] : memref<16x32xf32, #tpu.memory_space<vmem>>, vector<2x16xf32>
    tpu.vector_store %arg8[%446, %c0_113], %415 {strides = array<i32>} : memref<16x32xf32, #tpu.memory_space<vmem>>, vector<2x16xf32>,
    %c2_i32_114 = arith.constant 2 : i32
    %448 = arith.muli %378, %c2_i32_114 : i32
    %449 = arith.index_cast %448 : i32 to index
    %c16_115 = arith.constant 16 : index
    %450 = vector.load %arg8[%449, %c16_115] : memref<16x32xf32, #tpu.memory_space<vmem>>, vector<2x16xf32>
    tpu.vector_store %arg8[%449, %c16_115], %444 {strides = array<i32>} : memref<16x32xf32, #tpu.memory_space<vmem>>, vector<2x16xf32>,
    %451 = tpu.concatenate %415, %444 in 1 : vector<2x16xf32>, vector<2x16xf32> -> vector<2x32xf32>
    %c6_i32 = arith.constant 6 : i32
    %c7_i32_116 = arith.constant 7 : i32
    %452 = arith.subi %c7_i32_116, %c6_i32 : i32
    %c0_117 = arith.constant 0 : index
    %c0_118 = arith.constant 0 : index
    %453 = vector.load %arg3[%c0_117, %c0_118] : memref<32x128xf32, #tpu.memory_space<vmem>>, vector<32x128xf32>
    %cst_119 = arith.constant dense<0.000000e+00> : vector<2x128xf32>
    %454 = tpu.matmul %451, %453, %cst_119 {dimension_numbers = #tpu.dot_dimension_numbers<[1], [0], [0], [1], [0, 0, 1, 1], [], []>} : vector<2x32xf32>, vector<32x128xf32>, vector<2x128xf32> -> vector<2x128xf32>
    %c2_i32_120 = arith.constant 2 : i32
    %455 = arith.muli %c6_i32, %c2_i32_120 : i32
    %456 = arith.index_cast %455 : i32 to index
    %c0_121 = arith.constant 0 : index
    %457 = vector.load %arg7[%456, %c0_121] : memref<16x128xf32, #tpu.memory_space<vmem>>, vector<2x64xf32>
    %c2_i32_122 = arith.constant 2 : i32
    %458 = arith.muli %452, %c2_i32_122 : i32
    %459 = arith.index_cast %458 : i32 to index
    %c64_123 = arith.constant 64 : index
    %460 = vector.load %arg7[%459, %c64_123] : memref<16x128xf32, #tpu.memory_space<vmem>>, vector<2x64xf32>
    %461 = vector.extract_strided_slice %454 {offsets = [0, 0], sizes = [2, 64], strides = [1, 1]} : vector<2x128xf32> to vector<2x64xf32>
    %462 = arith.addf %457, %461 : vector<2x64xf32>
    %463 = vector.broadcast %4 : vector<1x64xf32> to vector<2x64xf32>
    %464 = arith.addf %462, %463 : vector<2x64xf32>
    %465 = vector.extract_strided_slice %464 {offsets = [0, 0], sizes = [2, 16], strides = [1, 1]} : vector<2x64xf32> to vector<2x16xf32>
    %466 = arith.negf %465 : vector<2x16xf32>
    %467 = math.exp %466 : vector<2x16xf32>
    %cst_124 = arith.constant 1.000000e+00 : f32
    %468 = vector.broadcast %cst_124 : f32 to vector<2x16xf32>
    %469 = arith.addf %468, %467 : vector<2x16xf32>
    %470 = arith.divf %468, %469 : vector<2x16xf32>
    %471 = vector.extract_strided_slice %464 {offsets = [0, 16], sizes = [2, 16], strides = [1, 1]} : vector<2x64xf32> to vector<2x16xf32>
    %472 = arith.negf %471 : vector<2x16xf32>
    %473 = math.exp %472 : vector<2x16xf32>
    %cst_125 = arith.constant 1.000000e+00 : f32
    %474 = vector.broadcast %cst_125 : f32 to vector<2x16xf32>
    %475 = arith.addf %474, %473 : vector<2x16xf32>
    %476 = arith.divf %474, %475 : vector<2x16xf32>
    %477 = vector.extract_strided_slice %464 {offsets = [0, 32], sizes = [2, 16], strides = [1, 1]} : vector<2x64xf32> to vector<2x16xf32>
    %478 = math.tanh %477 : vector<2x16xf32>
    %479 = vector.extract_strided_slice %464 {offsets = [0, 48], sizes = [2, 16], strides = [1, 1]} : vector<2x64xf32> to vector<2x16xf32>
    %480 = arith.negf %479 : vector<2x16xf32>
    %481 = math.exp %480 : vector<2x16xf32>
    %cst_126 = arith.constant 1.000000e+00 : f32
    %482 = vector.broadcast %cst_126 : f32 to vector<2x16xf32>
    %483 = arith.addf %482, %481 : vector<2x16xf32>
    %484 = arith.divf %482, %483 : vector<2x16xf32>
    %485 = arith.mulf %476, %413 : vector<2x16xf32>
    %486 = arith.mulf %470, %478 : vector<2x16xf32>
    %487 = arith.addf %485, %486 : vector<2x16xf32>
    %488 = math.tanh %487 : vector<2x16xf32>
    %489 = arith.mulf %484, %488 : vector<2x16xf32>
    %490 = vector.extract_strided_slice %454 {offsets = [0, 64], sizes = [2, 64], strides = [1, 1]} : vector<2x128xf32> to vector<2x64xf32>
    %491 = arith.addf %460, %490 : vector<2x64xf32>
    %492 = vector.broadcast %5 : vector<1x64xf32> to vector<2x64xf32>
    %493 = arith.addf %491, %492 : vector<2x64xf32>
    %494 = vector.extract_strided_slice %493 {offsets = [0, 0], sizes = [2, 16], strides = [1, 1]} : vector<2x64xf32> to vector<2x16xf32>
    %495 = arith.negf %494 : vector<2x16xf32>
    %496 = math.exp %495 : vector<2x16xf32>
    %cst_127 = arith.constant 1.000000e+00 : f32
    %497 = vector.broadcast %cst_127 : f32 to vector<2x16xf32>
    %498 = arith.addf %497, %496 : vector<2x16xf32>
    %499 = arith.divf %497, %498 : vector<2x16xf32>
    %500 = vector.extract_strided_slice %493 {offsets = [0, 16], sizes = [2, 16], strides = [1, 1]} : vector<2x64xf32> to vector<2x16xf32>
    %501 = arith.negf %500 : vector<2x16xf32>
    %502 = math.exp %501 : vector<2x16xf32>
    %cst_128 = arith.constant 1.000000e+00 : f32
    %503 = vector.broadcast %cst_128 : f32 to vector<2x16xf32>
    %504 = arith.addf %503, %502 : vector<2x16xf32>
    %505 = arith.divf %503, %504 : vector<2x16xf32>
    %506 = vector.extract_strided_slice %493 {offsets = [0, 32], sizes = [2, 16], strides = [1, 1]} : vector<2x64xf32> to vector<2x16xf32>
    %507 = math.tanh %506 : vector<2x16xf32>
    %508 = vector.extract_strided_slice %493 {offsets = [0, 48], sizes = [2, 16], strides = [1, 1]} : vector<2x64xf32> to vector<2x16xf32>
    %509 = arith.negf %508 : vector<2x16xf32>
    %510 = math.exp %509 : vector<2x16xf32>
    %cst_129 = arith.constant 1.000000e+00 : f32
    %511 = vector.broadcast %cst_129 : f32 to vector<2x16xf32>
    %512 = arith.addf %511, %510 : vector<2x16xf32>
    %513 = arith.divf %511, %512 : vector<2x16xf32>
    %514 = arith.mulf %505, %442 : vector<2x16xf32>
    %515 = arith.mulf %499, %507 : vector<2x16xf32>
    %516 = arith.addf %514, %515 : vector<2x16xf32>
    %517 = math.tanh %516 : vector<2x16xf32>
    %518 = arith.mulf %513, %517 : vector<2x16xf32>
    %c2_i32_130 = arith.constant 2 : i32
    %519 = arith.muli %c6_i32, %c2_i32_130 : i32
    %520 = arith.index_cast %519 : i32 to index
    %c0_131 = arith.constant 0 : index
    %521 = vector.load %arg8[%520, %c0_131] : memref<16x32xf32, #tpu.memory_space<vmem>>, vector<2x16xf32>
    tpu.vector_store %arg8[%520, %c0_131], %489 {strides = array<i32>} : memref<16x32xf32, #tpu.memory_space<vmem>>, vector<2x16xf32>,
    %c2_i32_132 = arith.constant 2 : i32
    %522 = arith.muli %452, %c2_i32_132 : i32
    %523 = arith.index_cast %522 : i32 to index
    %c16_133 = arith.constant 16 : index
    %524 = vector.load %arg8[%523, %c16_133] : memref<16x32xf32, #tpu.memory_space<vmem>>, vector<2x16xf32>
    tpu.vector_store %arg8[%523, %c16_133], %518 {strides = array<i32>} : memref<16x32xf32, #tpu.memory_space<vmem>>, vector<2x16xf32>,
    %525 = tpu.concatenate %489, %518 in 1 : vector<2x16xf32>, vector<2x16xf32> -> vector<2x32xf32>
    %c7_i32_134 = arith.constant 7 : i32
    %c7_i32_135 = arith.constant 7 : i32
    %526 = arith.subi %c7_i32_135, %c7_i32_134 : i32
    %c0_136 = arith.constant 0 : index
    %c0_137 = arith.constant 0 : index
    %527 = vector.load %arg3[%c0_136, %c0_137] : memref<32x128xf32, #tpu.memory_space<vmem>>, vector<32x128xf32>
    %cst_138 = arith.constant dense<0.000000e+00> : vector<2x128xf32>
    %528 = tpu.matmul %525, %527, %cst_138 {dimension_numbers = #tpu.dot_dimension_numbers<[1], [0], [0], [1], [0, 0, 1, 1], [], []>} : vector<2x32xf32>, vector<32x128xf32>, vector<2x128xf32> -> vector<2x128xf32>
    %c2_i32_139 = arith.constant 2 : i32
    %529 = arith.muli %c7_i32_134, %c2_i32_139 : i32
    %530 = arith.index_cast %529 : i32 to index
    %c0_140 = arith.constant 0 : index
    %531 = vector.load %arg7[%530, %c0_140] : memref<16x128xf32, #tpu.memory_space<vmem>>, vector<2x64xf32>
    %c2_i32_141 = arith.constant 2 : i32
    %532 = arith.muli %526, %c2_i32_141 : i32
    %533 = arith.index_cast %532 : i32 to index
    %c64_142 = arith.constant 64 : index
    %534 = vector.load %arg7[%533, %c64_142] : memref<16x128xf32, #tpu.memory_space<vmem>>, vector<2x64xf32>
    %535 = vector.extract_strided_slice %528 {offsets = [0, 0], sizes = [2, 64], strides = [1, 1]} : vector<2x128xf32> to vector<2x64xf32>
    %536 = arith.addf %531, %535 : vector<2x64xf32>
    %537 = vector.broadcast %4 : vector<1x64xf32> to vector<2x64xf32>
    %538 = arith.addf %536, %537 : vector<2x64xf32>
    %539 = vector.extract_strided_slice %538 {offsets = [0, 0], sizes = [2, 16], strides = [1, 1]} : vector<2x64xf32> to vector<2x16xf32>
    %540 = arith.negf %539 : vector<2x16xf32>
    %541 = math.exp %540 : vector<2x16xf32>
    %cst_143 = arith.constant 1.000000e+00 : f32
    %542 = vector.broadcast %cst_143 : f32 to vector<2x16xf32>
    %543 = arith.addf %542, %541 : vector<2x16xf32>
    %544 = arith.divf %542, %543 : vector<2x16xf32>
    %545 = vector.extract_strided_slice %538 {offsets = [0, 16], sizes = [2, 16], strides = [1, 1]} : vector<2x64xf32> to vector<2x16xf32>
    %546 = arith.negf %545 : vector<2x16xf32>
    %547 = math.exp %546 : vector<2x16xf32>
    %cst_144 = arith.constant 1.000000e+00 : f32
    %548 = vector.broadcast %cst_144 : f32 to vector<2x16xf32>
    %549 = arith.addf %548, %547 : vector<2x16xf32>
    %550 = arith.divf %548, %549 : vector<2x16xf32>
    %551 = vector.extract_strided_slice %538 {offsets = [0, 32], sizes = [2, 16], strides = [1, 1]} : vector<2x64xf32> to vector<2x16xf32>
    %552 = math.tanh %551 : vector<2x16xf32>
    %553 = vector.extract_strided_slice %538 {offsets = [0, 48], sizes = [2, 16], strides = [1, 1]} : vector<2x64xf32> to vector<2x16xf32>
    %554 = arith.negf %553 : vector<2x16xf32>
    %555 = math.exp %554 : vector<2x16xf32>
    %cst_145 = arith.constant 1.000000e+00 : f32
    %556 = vector.broadcast %cst_145 : f32 to vector<2x16xf32>
    %557 = arith.addf %556, %555 : vector<2x16xf32>
    %558 = arith.divf %556, %557 : vector<2x16xf32>
    %559 = arith.mulf %550, %487 : vector<2x16xf32>
    %560 = arith.mulf %544, %552 : vector<2x16xf32>
    %561 = arith.addf %559, %560 : vector<2x16xf32>
    %562 = math.tanh %561 : vector<2x16xf32>
    %563 = arith.mulf %558, %562 : vector<2x16xf32>
    %564 = vector.extract_strided_slice %528 {offsets = [0, 64], sizes = [2, 64], strides = [1, 1]} : vector<2x128xf32> to vector<2x64xf32>
    %565 = arith.addf %534, %564 : vector<2x64xf32>
    %566 = vector.broadcast %5 : vector<1x64xf32> to vector<2x64xf32>
    %567 = arith.addf %565, %566 : vector<2x64xf32>
    %568 = vector.extract_strided_slice %567 {offsets = [0, 0], sizes = [2, 16], strides = [1, 1]} : vector<2x64xf32> to vector<2x16xf32>
    %569 = arith.negf %568 : vector<2x16xf32>
    %570 = math.exp %569 : vector<2x16xf32>
    %cst_146 = arith.constant 1.000000e+00 : f32
    %571 = vector.broadcast %cst_146 : f32 to vector<2x16xf32>
    %572 = arith.addf %571, %570 : vector<2x16xf32>
    %573 = arith.divf %571, %572 : vector<2x16xf32>
    %574 = vector.extract_strided_slice %567 {offsets = [0, 16], sizes = [2, 16], strides = [1, 1]} : vector<2x64xf32> to vector<2x16xf32>
    %575 = arith.negf %574 : vector<2x16xf32>
    %576 = math.exp %575 : vector<2x16xf32>
    %cst_147 = arith.constant 1.000000e+00 : f32
    %577 = vector.broadcast %cst_147 : f32 to vector<2x16xf32>
    %578 = arith.addf %577, %576 : vector<2x16xf32>
    %579 = arith.divf %577, %578 : vector<2x16xf32>
    %580 = vector.extract_strided_slice %567 {offsets = [0, 32], sizes = [2, 16], strides = [1, 1]} : vector<2x64xf32> to vector<2x16xf32>
    %581 = math.tanh %580 : vector<2x16xf32>
    %582 = vector.extract_strided_slice %567 {offsets = [0, 48], sizes = [2, 16], strides = [1, 1]} : vector<2x64xf32> to vector<2x16xf32>
    %583 = arith.negf %582 : vector<2x16xf32>
    %584 = math.exp %583 : vector<2x16xf32>
    %cst_148 = arith.constant 1.000000e+00 : f32
    %585 = vector.broadcast %cst_148 : f32 to vector<2x16xf32>
    %586 = arith.addf %585, %584 : vector<2x16xf32>
    %587 = arith.divf %585, %586 : vector<2x16xf32>
    %588 = arith.mulf %579, %516 : vector<2x16xf32>
    %589 = arith.mulf %573, %581 : vector<2x16xf32>
    %590 = arith.addf %588, %589 : vector<2x16xf32>
    %591 = math.tanh %590 : vector<2x16xf32>
    %592 = arith.mulf %587, %591 : vector<2x16xf32>
    %c2_i32_149 = arith.constant 2 : i32
    %593 = arith.muli %c7_i32_134, %c2_i32_149 : i32
    %594 = arith.index_cast %593 : i32 to index
    %c0_150 = arith.constant 0 : index
    %595 = vector.load %arg8[%594, %c0_150] : memref<16x32xf32, #tpu.memory_space<vmem>>, vector<2x16xf32>
    tpu.vector_store %arg8[%594, %c0_150], %563 {strides = array<i32>} : memref<16x32xf32, #tpu.memory_space<vmem>>, vector<2x16xf32>,
    %c2_i32_151 = arith.constant 2 : i32
    %596 = arith.muli %526, %c2_i32_151 : i32
    %597 = arith.index_cast %596 : i32 to index
    %c16_152 = arith.constant 16 : index
    %598 = vector.load %arg8[%597, %c16_152] : memref<16x32xf32, #tpu.memory_space<vmem>>, vector<2x16xf32>
    tpu.vector_store %arg8[%597, %c16_152], %592 {strides = array<i32>} : memref<16x32xf32, #tpu.memory_space<vmem>>, vector<2x16xf32>,
    %599 = tpu.concatenate %563, %592 in 1 : vector<2x16xf32>, vector<2x16xf32> -> vector<2x32xf32>
    %c8_i32 = arith.constant 8 : i32
    %c0_153 = arith.constant 0 : index
    %c0_154 = arith.constant 0 : index
    %600 = vector.load %arg8[%c0_153, %c0_154] : memref<16x32xf32, #tpu.memory_space<vmem>>, vector<16x32xf32>
    %c0_155 = arith.constant 0 : index
    %c0_156 = arith.constant 0 : index
    %601 = vector.load %arg5[%c0_155, %c0_156] : memref<32x16xf32, #tpu.memory_space<vmem>>, vector<32x16xf32>
    %cst_157 = arith.constant dense<0.000000e+00> : vector<16x16xf32>
    %602 = tpu.matmul %600, %601, %cst_157 {dimension_numbers = #tpu.dot_dimension_numbers<[1], [0], [0], [1], [0, 0, 1, 1], [], []>} : vector<16x32xf32>, vector<32x16xf32>, vector<16x16xf32> -> vector<16x16xf32>
    %c0_158 = arith.constant 0 : index
    %c0_159 = arith.constant 0 : index
    %603 = vector.load %arg6[%c0_158, %c0_159] : memref<16x16xf32, #tpu.memory_space<vmem>>, vector<16x16xf32>
    tpu.vector_store %arg6[%c0_158, %c0_159], %602 {strides = array<i32>} : memref<16x16xf32, #tpu.memory_space<vmem>>, vector<16x16xf32>,
    return
  }
  func.func @transform_0(%arg0: i32) -> (i32, i32) {
    %c0_i32 = arith.constant 0 : i32
    %c0_i32_0 = arith.constant 0 : i32
    %c0_i32_1 = arith.constant 0 : i32
    return %c0_i32, %c0_i32_0 : i32, i32
  }
  func.func @transform_1(%arg0: i32) -> (i32, i32) {
    %c0_i32 = arith.constant 0 : i32
    %c0_i32_0 = arith.constant 0 : i32
    %c0_i32_1 = arith.constant 0 : i32
    return %c0_i32, %c0_i32_0 : i32, i32
  }
  func.func @transform_2(%arg0: i32) -> (i32, i32) {
    %c0_i32 = arith.constant 0 : i32
    %c0_i32_0 = arith.constant 0 : i32
    %c0_i32_1 = arith.constant 0 : i32
    return %c0_i32, %c0_i32_0 : i32, i32
  }
  func.func @transform_3(%arg0: i32) -> (i32, i32) {
    %c0_i32 = arith.constant 0 : i32
    %c0_i32_0 = arith.constant 0 : i32
    %c0_i32_1 = arith.constant 0 : i32
    return %c0_i32, %c0_i32_0 : i32, i32
  }
  func.func @transform_4(%arg0: i32) -> (i32, i32) {
    %c0_i32 = arith.constant 0 : i32
    %c0_i32_0 = arith.constant 0 : i32
    %c0_i32_1 = arith.constant 0 : i32
    return %c0_i32, %c0_i32_0 : i32, i32
  }
  func.func @transform_5(%arg0: i32) -> (i32, i32) {
    %c0_i32 = arith.constant 0 : i32
    %c0_i32_0 = arith.constant 0 : i32
    %c0_i32_1 = arith.constant 0 : i32
    return %c0_i32, %c0_i32_0 : i32, i32
  }
}

</mosaic_0001>

<bundles_post_ra>
// kernel: bilstm_project.1
= control target key start
LH: loop header
LB: loop body
LE: loop exit
PB: predicated region body
PF: predicated region fallthrough
CT: control target
= control target key end

     0   :  { %10 = vsyncpa [#allocation5], 0  ;;  %s1604_s0 = inlined_call_operand.vmem [shape: f32[16,16], index: 0, kind: input, shape index: {}]   ;;  %s1605_s1 = inlined_call_operand.hbm [shape: f32[16,128], index: 1, kind: input, shape index: {}]   ;;  %s1606_s2 = inlined_call_operand.vmem [shape: f32[32,128], index: 2, kind: input, shape index: {}]   ;;  %s1607_s3 = inlined_call_operand.vmem [shape: f32[1,128], index: 3, kind: input, shape index: {}]   ;;  %s1608_s4 = inlined_call_operand.vmem [shape: f32[32,16], index: 4, kind: input, shape index: {}]   ;;  %s1609_s5 = inlined_call_operand.hbm [shape: f32[16,16], index: 5, kind: output, shape index: {}]  }
   0x1   :  { %11 = vsyncpa [#allocation6], 0  ;;  %s18_s20 = sshll.u32 %s1605_s1, 4  ;;  %s1297_s21 = smov [#allocation4]   ;;  %s19_s20 = int_to_ptr.hbm [resolvable:$true] %s18_s20 }
   0x2   :  { %s20_s22 = sshll.u32 %s1297_s21, 4  ;;  %s1298_s23 = smov 128   ;;  %s21_s22 = int_to_ptr.vmem [resolvable:$true] %s20_s22 }
   0x3   :  { %s1299_s24 = smov 8  }
   0x4   :  { %26 = dma.hbm_to_vmem [thread:$0]  %s19_s20, 256, %s21_s22, [#allocation5], %s1298_s23, %s1298_s23, %s1299_s24  }
   0x5   :  { %1293 = dma.done.wait [#allocation5], 256  }
   0x6   :  { %1294 = vsyncadd [#allocation5], 4294967040  ;;  %v40_v0 = vld [vmem:[#allocation4 + $0x8] sm:$0xff]  ;;  %v39_v1 = vld [vmem:[#allocation4] sm:$0xff]  ;;  %vm41_vm0 = vcmask 130048   ;;  %v1300_v8 = vmov 0.0  }
   0x7   :  { %62 = vmatpush.msra.mxu0 %v40_v0  ;;  %v37_v2 = vld [vmem:[%s1604_s0] sm:$0xff]  ;;  %v1348_v3 = vld [vmem:[%s1606_s2 + $0x18] sm:$0xff]  ;;  %v1353_v4 = vld [vmem:[%s1606_s2 + $0x10] sm:$0xff]  ;;  %s1301_s12 = smov 96   ;;  %s1302_s13 = smov 16   ;;  %vm189_vm9 = vcmask 123904  }
   0x8   :  { %94 = vmatpush.msra.mxu1 %v1348_v3  ;;  %217 = vmatpush.msra.mxu3 %v1348_v3  ;;  %v1360_v5 = vld [vmem:[%s1606_s2 + $0x8] sm:$0xff]  ;;  %v1368_v6 = vld [vmem:[%s1606_s2] sm:$0xff]  ;;  %s1303_s14 = smov 32   ;;  %s1304_s15 = smov 80   ;;  %vm195_vm10 = vcmask 255104   ;;  %vm78_vm11 = vcmask 261120  }
   0x9   :  { %63 = vmatpush.msra.mxu0 %v39_v1  ;;  %571 = vmatpush.msra.mxu2 %v1348_v3  ;;  %v38_v7 = vld [vmem:[%s1604_s0 + $0x8] sm:$0xff]  ;;  %v1397_v11 = vld [vmem:[%s1607_s3] ss:$0 sm:$0xff]  ;;  %s1305_s8 = smov [#allocation7]   ;;  %s1066_s0 = sshll.u32 %s1609_s5, 4  ;;  %s1067_s0 = int_to_ptr.hbm [resolvable:$true] %s1066_s0 }
   0xa   :  { %1079 = vmatmul.msk.f32.vlgmr.msra.gmra.mxu0 %vm41_vm0, %v37_v2  ;;  %95 = vmatpush.msra.mxu1 %v1353_v4  ;;  %s1064_s9 = sshll.u32 %s1305_s8, 4  ;;  %s1065_s9 = int_to_ptr.vmem [resolvable:$true] %s1064_s9 }
   0xb   :  { %218 = vmatpush.msra.mxu3 %v1353_v4  ;;  %572 = vmatpush.msra.mxu2 %v1353_v4 }
   0xc   :  { %96 = vmatpush.msra.mxu1 %v1360_v5  ;;  %807 = vmatpush.msrb.mxu0 %v1348_v3 }
   0xd   :  { %219 = vmatpush.msra.mxu3 %v1360_v5  ;;  %573 = vmatpush.msra.mxu2 %v1360_v5 }
   0xe   :  { %97 = vmatpush.msra.mxu1 %v1368_v6  ;;  %808 = vmatpush.msrb.mxu0 %v1353_v4 }
   0xf   :  { %98 = vmatmul.f32.vlgmr.msra.gmra.mxu1 %v1300_v8  ;;  %220 = vmatpush.msra.mxu3 %v1368_v6 }
  0x10   :  { %453 = vmatpush.msrb.mxu1 %v1348_v3  ;;  %574 = vmatpush.msra.mxu2 %v1368_v6 }
  0x11   :  { %335 = vmatpush.msrb.mxu3 %v1348_v3  ;;  %809 = vmatpush.msrb.mxu0 %v1360_v5 }
  0x12   :  { %1080 = vmatmul.msk.f32.gmra.mxu0 %vm41_vm0, %v38_v7  ;;  %454 = vmatpush.msrb.mxu1 %v1353_v4 }
  0x13   :  { %336 = vmatpush.msrb.mxu3 %v1353_v4  ;;  %810 = vmatpush.msrb.mxu0 %v1368_v6 }
  0x14   :  { %455 = vmatpush.msrb.mxu1 %v1360_v5 }
  0x15   :  { %337 = vmatpush.msrb.mxu3 %v1360_v5 }
  0x16   :  { %456 = vmatpush.msrb.mxu1 %v1368_v6 }
  0x17   :  { %338 = vmatpush.msrb.mxu3 %v1368_v6 }
  0x87   :  { %v65_v9 = vpop.f32.mrf.mxu0 }
  0x88   :  { %71 = vst [vmem:[#allocation2] sm:$0xff] %v65_v9 }
  0x8c   :  { %v99_v10 = vpop.f32.mrf.mxu1 }
  0x8f   :  { %v68_v12 = vpop.f32.mrf.mxu0  ;;  %v102_v13 = vld [vmem:[#allocation2] sm:$0x3]  ;;  %v225_v7 = vld [vmem:[#allocation2 + $0x2] sm:$0x3] }
  0x90   :  { %72 = vst [vmem:[#allocation2 + $0x8] sm:$0xff] %v68_v12  ;;  %v104_v14 = vadd.f32 %v102_v13, %v99_v10 }
  0x92   :  { %v108_v15 = vadd.f32 %v1397_v11, %v104_v14 }
  0x94   :  { %1116 = vtanh.f32 %v108_v15  ;;  %v1081_v21 = vmul.f32 -1.442695, %v108_v15 }
  0x97   :  { %v103_v16 = vld [vmem:[#allocation2 + $0xe] sm:$0x3]  ;;  %v226_v8 = vld [vmem:[#allocation2 + $0xc] sm:$0x3] }
  0x98   :  { %v146_v17 = vadd.f32 %v103_v16, %v99_v10 }
  0x9a   :  { %v1117_v18 = vpop.eup %1116  ;;  %v147_v19 = vadd.f32 %v1397_v11, %v146_v17 }
  0x9b   :  { %131 = vrot.lane.b32.xlu0 %v1117_v18, %s1301_s12 }
  0x9c   :  { %1118 = vtanh.f32 %v147_v19  ;;  %v1082_v22 = vmul.f32 -1.442695, %v147_v19 }
  0x9d   :  { %1120 = vpow2.f32 %v1081_v21 }
  0x9e   :  { %1122 = vpow2.f32 %v1082_v22 }
  0xa2   :  { %v1119_v20 = vpop.eup %1118 }
  0xa3   :  { %170 = vrot.lane.b32.xlu0 %v1119_v20, %s1301_s12  ;;  %v1121_v23 = vpop.eup %1120 }
  0xa4   :  { %v112_v24 = vadd.f32 1.0, %v1121_v23  ;;  %v1123_v25 = vpop.eup %1122 }
  0xa5   :  { %v151_v26 = vadd.f32 1.0, %v1123_v25 }
  0xa6   :  { %1124 = vrcp.f32 %v112_v24  ;;  %v124_v35 = vand.u32 2147483648, %v112_v24  ;;  %vm118_vm2 = vweird.f32 %v112_v24  ;;  %v122_v36 = vand.u32 2147483647, %v112_v24 }
  0xa7   :  { %1126 = vrcp.f32 %v151_v26  ;;  %v163_v44 = vand.u32 2147483648, %v151_v26  ;;  %vm157_vm6 = vweird.f32 %v151_v26  ;;  %v161_v45 = vand.u32 2147483647, %v151_v26 }
  0xa8   :  { %v125_v39 = vor.u32 1.1754944e-38, %v124_v35  ;;  %vm123_vm4 = vcmp.eq.f32.partialorder %v122_v36, 8.507059e+37 }
  0xa9   :  { %v164_v47 = vor.u32 1.1754944e-38, %v163_v44  ;;  %vm162_vm8 = vcmp.eq.f32.partialorder %v161_v45, 8.507059e+37 }
  0xac   :  { %v1125_v27 = vpop.eup %1124 }
  0xad   :  { %v114_v28 = vmul.f32 %v1125_v27, %v112_v24  ;;  %v1127_v30 = vpop.eup %1126  ;;  %vm119_vm1 = vweird.f32 %v1125_v27 }
  0xae   :  { %v153_v32 = vmul.f32 %v1127_v30, %v151_v26  ;;  %vm120_vm3 = vmor %vm118_vm2, %vm119_vm1  ;;  %vm158_vm5 = vweird.f32 %v1127_v30 }
  0xaf   :  { %v115_v29 = vsub.f32 1.0, %v114_v28  ;;  %vm159_vm7 = vmor %vm157_vm6, %vm158_vm5 }
  0xb0   :  { %v154_v34 = vsub.f32 1.0, %v153_v32 }
  0xb1   :  { %v116_v31 = vmul.f32 %v1125_v27, %v115_v29 }
  0xb2   :  { %v155_v38 = vmul.f32 %v1127_v30, %v154_v34 }
  0xb3   :  { %v117_v33 = vadd.f32 %v1125_v27, %v116_v31 }
  0xb4   :  { %v156_v43 = vadd.f32 %v1127_v30, %v155_v38 }
  0xb5   :  { %v121_v37 = vsel %vm120_vm3, %v1125_v27, %v117_v33 }
  0xb6   :  { %v126_v41 = vsel %vm123_vm4, %v125_v39, %v121_v37  ;;  %v160_v46 = vsel %vm159_vm7, %v1127_v30, %v156_v43 }
  0xb7   :  { %v165_v49 = vsel %vm162_vm8, %v164_v47, %v160_v46  ;;  %v129_v51 = vmul.f32 0.0, %v126_v41 }
  0xb8   :  { %v168_v54 = vmul.f32 0.0, %v165_v49 }
 0x10d   :  { %v132_v40 = vpop.permute.xlu0 %131 }
 0x10e   :  { %v134_v42 = vmul.f32 %v132_v40, %v126_v41 }
 0x110   :  { %136 = vrot.lane.b32.xlu1 %v134_v42, %s1302_s13 }
 0x115   :  { %v171_v48 = vpop.permute.xlu0 %170 }
 0x116   :  { %v173_v50 = vmul.f32 %v171_v48, %v165_v49 }
 0x118   :  { %175 = vrot.lane.b32.xlu1 %v173_v50, %s1302_s13 }
 0x182   :  { %v137_v52 = vpop.permute.xlu1 %136 }
 0x183   :  { %v1405_v53 = vadd.f32 %v137_v52, %v129_v51 }
 0x185   :  { %1128 = vtanh.f32 %v1405_v53 }
 0x18a   :  { %v176_v55 = vpop.permute.xlu1 %175 }
 0x18b   :  { %v1129_v56 = vpop.eup %1128  ;;  %v1408_v57 = vadd.f32 %v176_v55, %v168_v54 }
 0x18c   :  { %142 = vrot.lane.b32.xlu2 %v1129_v56, %s1303_s14 }
 0x18d   :  { %1130 = vtanh.f32 %v1408_v57 }
 0x193   :  { %v1131_v58 = vpop.eup %1130 }
 0x194   :  { %181 = vrot.lane.b32.xlu2 %v1131_v58, %s1303_s14  ;;  %v343_v58 = vld [vmem:[#allocation2 + $0x4] sm:$0x3] }
 0x1e6   :  { %v143_v59 = vpop.permute.xlu2 %142 }
 0x1e7   :  { %v145_v60 = vmul.f32 %v143_v59, %v126_v41  ;;  %v344_v59 = vld [vmem:[#allocation2 + $0xa] sm:$0x3] }
 0x1e9   :  { %186 = vrot.lane.b32.xlu0 %v145_v60, %s1304_s15 }
 0x1ee   :  { %v182_v61 = vpop.permute.xlu2 %181 }
 0x1ef   :  { %v184_v62 = vmul.f32 %v182_v61, %v165_v49 }
 0x1f1   :  { %192 = vrot.lane.b32.xlu1 %v184_v62, %s1303_s14 }
 0x25b   :  { %v187_v63 = vpop.permute.xlu0 %186 }
 0x25c   :  { %190 = vst.msk [vmem:[#allocation3] sm:$0x3] %vm189_vm9, %v187_v63 }
 0x263   :  { %v193_v0 = vpop.permute.xlu1 %192 }
 0x264   :  { %196 = vst.msk [vmem:[#allocation3 + $0xe] sm:$0x3] %vm195_vm10, %v193_v0  ;;  %v197_v1 = vsel %vm41_vm0, %v187_v63, %v193_v0 }
 0x265   :  { %1083 = vmatmul.msk.f32.vlgmr.msra.gmra.mxu3 %vm78_vm11, %v197_v1 }
 0x266   :  { %689 = vmatpush.msra.mxu3 %v1348_v3 }
 0x268   :  { %690 = vmatpush.msra.mxu3 %v1353_v4 }
 0x26a   :  { %691 = vmatpush.msra.mxu3 %v1360_v5 }
 0x26c   :  { %692 = vmatpush.msra.mxu3 %v1368_v6 }
 0x2e8   :  { %v222_v2 = vpop.f32.mrf.mxu3 }
 0x2e9   :  { %v227_v9 = vadd.f32 %v225_v7, %v222_v2  ;;  %v266_v10 = vadd.f32 %v226_v8, %v222_v2 }
 0x2eb   :  { %v228_v12 = vadd.f32 %v1397_v11, %v227_v9  ;;  %v267_v13 = vadd.f32 %v1397_v11, %v266_v10 }
 0x2ed   :  { %1132 = vtanh.f32 %v228_v12  ;;  %v1084_v3 = vmul.f32 -1.442695, %v228_v12  ;;  %v1085_v16 = vmul.f32 -1.442695, %v267_v13 }
 0x2ee   :  { %1134 = vtanh.f32 %v267_v13 }
 0x2ef   :  { %1136 = vpow2.f32 %v1084_v3 }
 0x2f3   :  { %v1133_v14 = vpop.eup %1132 }
 0x2f4   :  { %v1135_v15 = vpop.eup %1134  ;;  %251 = vrot.lane.b32.xlu2 %v1133_v14, %s1301_s12 }
 0x2f5   :  { %290 = vrot.lane.b32.xlu0 %v1135_v15, %s1301_s12  ;;  %v1137_v4 = vpop.eup %1136 }
 0x2f6   :  { %v232_v5 = vadd.f32 1.0, %v1137_v4 }
 0x2f8   :  { %1138 = vrcp.f32 %v232_v5  ;;  %v244_v23 = vand.u32 2147483648, %v232_v5  ;;  %vm238_vm13 = vweird.f32 %v232_v5  ;;  %v242_v24 = vand.u32 2147483647, %v232_v5 }
 0x2f9   :  { %1140 = vpow2.f32 %v1085_v16 }
 0x2fa   :  { %v245_v26 = vor.u32 1.1754944e-38, %v244_v23  ;;  %vm243_vm15 = vcmp.eq.f32.partialorder %v242_v24, 8.507059e+37 }
 0x2fe   :  { %v1139_v6 = vpop.eup %1138 }
 0x2ff   :  { %v234_v17 = vmul.f32 %v1139_v6, %v232_v5  ;;  %v1141_v20 = vpop.eup %1140  ;;  %vm239_vm12 = vweird.f32 %v1139_v6 }
 0x300   :  { %v271_v21 = vadd.f32 1.0, %v1141_v20  ;;  %vm240_vm14 = vmor %vm238_vm13, %vm239_vm12 }
 0x301   :  { %v235_v18 = vsub.f32 1.0, %v234_v17 }
 0x302   :  { %1142 = vrcp.f32 %v271_v21  ;;  %v283_v35 = vand.u32 2147483648, %v271_v21  ;;  %vm277_vm2 = vweird.f32 %v271_v21  ;;  %v281_v36 = vand.u32 2147483647, %v271_v21 }
 0x303   :  { %v236_v19 = vmul.f32 %v1139_v6, %v235_v18 }
 0x304   :  { %v284_v38 = vor.u32 1.1754944e-38, %v283_v35  ;;  %vm282_vm4 = vcmp.eq.f32.partialorder %v281_v36, 8.507059e+37 }
 0x305   :  { %v237_v22 = vadd.f32 %v1139_v6, %v236_v19 }
 0x307   :  { %v241_v25 = vsel %vm240_vm14, %v1139_v6, %v237_v22 }
 0x308   :  { %v246_v28 = vsel %vm243_vm15, %v245_v26, %v241_v25  ;;  %v1143_v30 = vpop.eup %1142 }
 0x309   :  { %v273_v31 = vmul.f32 %v1143_v30, %v271_v21  ;;  %vm278_vm1 = vweird.f32 %v1143_v30  ;;  %v249_v42 = vmul.f32 %v246_v28, %v1405_v53 }
 0x30a   :  { %vm279_vm3 = vmor %vm277_vm2, %vm278_vm1 }
 0x30b   :  { %v274_v32 = vsub.f32 1.0, %v273_v31 }
 0x30d   :  { %v275_v33 = vmul.f32 %v1143_v30, %v274_v32 }
 0x30f   :  { %v276_v34 = vadd.f32 %v1143_v30, %v275_v33 }
 0x311   :  { %v280_v37 = vsel %vm279_vm3, %v1143_v30, %v276_v34 }
 0x312   :  { %v285_v40 = vsel %vm282_vm4, %v284_v38, %v280_v37 }
 0x313   :  { %v288_v43 = vmul.f32 %v285_v40, %v1408_v57 }
 0x34e   :  { %v252_v27 = vpop.permute.xlu2 %251 }
 0x34f   :  { %v254_v29 = vmul.f32 %v252_v27, %v246_v28 }
 0x351   :  { %256 = vrot.lane.b32.xlu1 %v254_v29, %s1302_s13 }
 0x367   :  { %v291_v39 = vpop.permute.xlu0 %290 }
 0x368   :  { %v293_v41 = vmul.f32 %v291_v39, %v285_v40 }
 0x36a   :  { %295 = vrot.lane.b32.xlu2 %v293_v41, %s1302_s13 }
 0x3c3   :  { %v257_v44 = vpop.permute.xlu1 %256 }
 0x3c4   :  { %v296_v45 = vpop.permute.xlu2 %295  ;;  %v1431_v46 = vadd.f32 %v257_v44, %v249_v42 }
 0x3c5   :  { %v1433_v47 = vadd.f32 %v296_v45, %v288_v43 }
 0x3c6   :  { %1144 = vtanh.f32 %v1431_v46 }
 0x3c7   :  { %1146 = vtanh.f32 %v1433_v47 }
 0x3cc   :  { %v1145_v48 = vpop.eup %1144 }
 0x3cd   :  { %v1147_v49 = vpop.eup %1146  ;;  %262 = vrot.lane.b32.xlu0 %v1145_v48, %s1303_s14 }
 0x3ce   :  { %301 = vrot.lane.b32.xlu1 %v1147_v49, %s1303_s14  ;;  %v461_v49 = vld [vmem:[#allocation2 + $0x6] sm:$0x3] }
 0x43f   :  { %v263_v50 = vpop.permute.xlu0 %262 }
 0x440   :  { %v302_v51 = vpop.permute.xlu1 %301  ;;  %v265_v52 = vmul.f32 %v263_v50, %v246_v28  ;;  %v462_v50 = vld [vmem:[#allocation2 + $0x8] sm:$0x3] }
 0x441   :  { %v304_v53 = vmul.f32 %v302_v51, %v285_v40 }
 0x442   :  { %306 = vrot.lane.b32.xlu2 %v265_v52, %s1304_s15 }
 0x443   :  { %311 = vrot.lane.b32.xlu0 %v304_v53, %s1303_s14 }
 0x49c   :  { %v307_v54 = vpop.permute.xlu2 %306 }
 0x49d   :  { %309 = vst.msk [vmem:[#allocation3 + $0x2] sm:$0x3] %vm189_vm9, %v307_v54 }
 0x4b5   :  { %v312_v55 = vpop.permute.xlu0 %311 }
 0x4b6   :  { %314 = vst.msk [vmem:[#allocation3 + $0xc] sm:$0x3] %vm195_vm10, %v312_v55  ;;  %v315_v56 = vsel %vm41_vm0, %v307_v54, %v312_v55 }
 0x4b7   :  { %1086 = vmatmul.msk.f32.vlgmr.msrb.gmra.mxu3 %vm78_vm11, %v315_v56 }
 0x53a   :  { %v340_v57 = vpop.f32.mrf.mxu3 }
 0x53b   :  { %v345_v60 = vadd.f32 %v343_v58, %v340_v57  ;;  %v384_v61 = vadd.f32 %v344_v59, %v340_v57 }
 0x53d   :  { %v346_v62 = vadd.f32 %v1397_v11, %v345_v60  ;;  %v385_v63 = vadd.f32 %v1397_v11, %v384_v61 }
 0x53f   :  { %1148 = vtanh.f32 %v346_v62  ;;  %v1088_v2 = vmul.f32 -1.442695, %v385_v63  ;;  %v1087_v10 = vmul.f32 -1.442695, %v346_v62 }
 0x540   :  { %1150 = vtanh.f32 %v385_v63 }
 0x541   :  { %1152 = vpow2.f32 %v1088_v2 }
 0x545   :  { %v1149_v0 = vpop.eup %1148 }
 0x546   :  { %v1151_v1 = vpop.eup %1150  ;;  %369 = vrot.lane.b32.xlu1 %v1149_v0, %s1301_s12 }
 0x547   :  { %408 = vrot.lane.b32.xlu2 %v1151_v1, %s1301_s12  ;;  %v1153_v7 = vpop.eup %1152 }
 0x548   :  { %v389_v8 = vadd.f32 1.0, %v1153_v7 }
 0x54a   :  { %1154 = vrcp.f32 %v389_v8  ;;  %v401_v5 = vand.u32 2147483648, %v389_v8  ;;  %vm395_vm6 = vweird.f32 %v389_v8  ;;  %v399_v6 = vand.u32 2147483647, %v389_v8 }
 0x54b   :  { %1156 = vpow2.f32 %v1087_v10 }
 0x54c   :  { %v402_v17 = vor.u32 1.1754944e-38, %v401_v5  ;;  %vm400_vm8 = vcmp.eq.f32.partialorder %v399_v6, 8.507059e+37 }
 0x550   :  { %v1155_v9 = vpop.eup %1154 }
 0x551   :  { %v391_v12 = vmul.f32 %v1155_v9, %v389_v8  ;;  %v1157_v14 = vpop.eup %1156  ;;  %vm396_vm5 = vweird.f32 %v1155_v9 }
 0x552   :  { %v350_v3 = vadd.f32 1.0, %v1157_v14  ;;  %vm397_vm7 = vmor %vm395_vm6, %vm396_vm5 }
 0x553   :  { %v392_v13 = vsub.f32 1.0, %v391_v12 }
 0x554   :  { %1158 = vrcp.f32 %v350_v3  ;;  %v362_v26 = vand.u32 2147483648, %v350_v3  ;;  %vm356_vm13 = vweird.f32 %v350_v3  ;;  %v360_v27 = vand.u32 2147483647, %v350_v3 }
 0x555   :  { %v393_v15 = vmul.f32 %v1155_v9, %v392_v13 }
 0x556   :  { %v363_v29 = vor.u32 1.1754944e-38, %v362_v26  ;;  %vm361_vm15 = vcmp.eq.f32.partialorder %v360_v27, 8.507059e+37 }
 0x557   :  { %v394_v4 = vadd.f32 %v1155_v9, %v393_v15 }
 0x559   :  { %v398_v16 = vsel %vm397_vm7, %v1155_v9, %v394_v4 }
 0x55a   :  { %v403_v19 = vsel %vm400_vm8, %v402_v17, %v398_v16  ;;  %v1159_v20 = vpop.eup %1158 }
 0x55b   :  { %v352_v22 = vmul.f32 %v1159_v20, %v350_v3  ;;  %vm357_vm12 = vweird.f32 %v1159_v20  ;;  %v406_v33 = vmul.f32 %v403_v19, %v1433_v47 }
 0x55c   :  { %vm358_vm14 = vmor %vm356_vm13, %vm357_vm12 }
 0x55d   :  { %v353_v23 = vsub.f32 1.0, %v352_v22 }
 0x55f   :  { %v354_v24 = vmul.f32 %v1159_v20, %v353_v23 }
 0x561   :  { %v355_v25 = vadd.f32 %v1159_v20, %v354_v24 }
 0x563   :  { %v359_v28 = vsel %vm358_vm14, %v1159_v20, %v355_v25 }
 0x564   :  { %v364_v31 = vsel %vm361_vm15, %v363_v29, %v359_v28 }
 0x565   :  { %v367_v37 = vmul.f32 %v364_v31, %v1431_v46 }
 0x5a1   :  { %v409_v18 = vpop.permute.xlu2 %408 }
 0x5a2   :  { %v411_v21 = vmul.f32 %v409_v18, %v403_v19 }
 0x5a4   :  { %413 = vrot.lane.b32.xlu1 %v411_v21, %s1302_s13 }
 0x5b8   :  { %v370_v30 = vpop.permute.xlu1 %369 }
 0x5b9   :  { %v372_v32 = vmul.f32 %v370_v30, %v364_v31 }
 0x5bb   :  { %374 = vrot.lane.b32.xlu0 %v372_v32, %s1302_s13 }
 0x616   :  { %v414_v34 = vpop.permute.xlu1 %413 }
 0x617   :  { %v1452_v35 = vadd.f32 %v414_v34, %v406_v33 }
 0x619   :  { %1160 = vtanh.f32 %v1452_v35 }
 0x61f   :  { %v1161_v36 = vpop.eup %1160 }
 0x620   :  { %419 = vrot.lane.b32.xlu0 %v1161_v36, %s1303_s14 }
 0x62d   :  { %v375_v38 = vpop.permute.xlu0 %374 }
 0x62e   :  { %v1457_v39 = vadd.f32 %v375_v38, %v367_v37 }
 0x630   :  { %1162 = vtanh.f32 %v1457_v39 }
 0x636   :  { %v1163_v40 = vpop.eup %1162 }
 0x637   :  { %380 = vrot.lane.b32.xlu2 %v1163_v40, %s1303_s14  ;;  %v579_v40 = vld [vmem:[#allocation2 + $0x8] sm:$0x3] }
 0x691   :  { %v381_v41 = vpop.permute.xlu2 %380 }
 0x692   :  { %v420_v42 = vpop.permute.xlu0 %419  ;;  %v383_v43 = vmul.f32 %v381_v41, %v364_v31  ;;  %v580_v41 = vld [vmem:[#allocation2 + $0x6] sm:$0x3] }
 0x693   :  { %v422_v44 = vmul.f32 %v420_v42, %v403_v19 }
 0x694   :  { %424 = vrot.lane.b32.xlu1 %v383_v43, %s1304_s15 }
 0x695   :  { %429 = vrot.lane.b32.xlu2 %v422_v44, %s1303_s14 }
 0x6ef   :  { %v430_v45 = vpop.permute.xlu2 %429 }
 0x6f0   :  { %432 = vst.msk [vmem:[#allocation3 + $0xa] sm:$0x3] %vm195_vm10, %v430_v45 }
 0x706   :  { %v425_v46 = vpop.permute.xlu1 %424 }
 0x707   :  { %427 = vst.msk [vmem:[#allocation3 + $0x4] sm:$0x3] %vm189_vm9, %v425_v46  ;;  %v433_v47 = vsel %vm41_vm0, %v425_v46, %v430_v45 }
 0x708   :  { %1089 = vmatmul.msk.f32.vlgmr.msrb.gmra.mxu1 %vm78_vm11, %v433_v47 }
 0x785   :  { %v458_v48 = vpop.f32.mrf.mxu1 }
 0x786   :  { %v463_v51 = vadd.f32 %v461_v49, %v458_v48  ;;  %v502_v52 = vadd.f32 %v462_v50, %v458_v48 }
 0x788   :  { %v464_v53 = vadd.f32 %v1397_v11, %v463_v51  ;;  %v503_v54 = vadd.f32 %v1397_v11, %v502_v52 }
 0x78a   :  { %1164 = vtanh.f32 %v464_v53  ;;  %v1090_v57 = vmul.f32 -1.442695, %v464_v53  ;;  %v1091_v58 = vmul.f32 -1.442695, %v503_v54 }
 0x78b   :  { %1166 = vtanh.f32 %v503_v54 }
 0x78c   :  { %1168 = vpow2.f32 %v1090_v57 }
 0x78d   :  { %1170 = vpow2.f32 %v1091_v58 }
 0x790   :  { %v1165_v55 = vpop.eup %1164 }
 0x791   :  { %v1167_v56 = vpop.eup %1166  ;;  %487 = vrot.lane.b32.xlu0 %v1165_v55, %s1301_s12 }
 0x792   :  { %526 = vrot.lane.b32.xlu1 %v1167_v56, %s1301_s12  ;;  %v1169_v59 = vpop.eup %1168 }
 0x793   :  { %v1171_v60 = vpop.eup %1170  ;;  %v468_v61 = vadd.f32 1.0, %v1169_v59 }
 0x794   :  { %v507_v62 = vadd.f32 1.0, %v1171_v60 }
 0x795   :  { %1172 = vrcp.f32 %v468_v61  ;;  %v480_v14 = vand.u32 2147483648, %v468_v61  ;;  %vm474_vm3 = vweird.f32 %v468_v61  ;;  %v478_v3 = vand.u32 2147483647, %v468_v61 }
 0x796   :  { %1174 = vrcp.f32 %v507_v62  ;;  %v519_v15 = vand.u32 2147483648, %v507_v62  ;;  %vm513_vm4 = vweird.f32 %v507_v62  ;;  %v517_v4 = vand.u32 2147483647, %v507_v62 }
 0x797   :  { %v481_v16 = vor.u32 1.1754944e-38, %v480_v14  ;;  %vm479_vm7 = vcmp.eq.f32.partialorder %v478_v3, 8.507059e+37 }
 0x798   :  { %v520_v17 = vor.u32 1.1754944e-38, %v519_v15  ;;  %vm518_vm8 = vcmp.eq.f32.partialorder %v517_v4, 8.507059e+37 }
 0x79b   :  { %v1173_v63 = vpop.eup %1172 }
 0x79c   :  { %v1175_v0 = vpop.eup %1174  ;;  %v470_v1 = vmul.f32 %v1173_v63, %v468_v61  ;;  %vm475_vm1 = vweird.f32 %v1173_v63 }
 0x79d   :  { %v509_v2 = vmul.f32 %v1175_v0, %v507_v62  ;;  %vm514_vm2 = vweird.f32 %v1175_v0  ;;  %vm476_vm5 = vmor %vm474_vm3, %vm475_vm1 }
 0x79e   :  { %v471_v7 = vsub.f32 1.0, %v470_v1  ;;  %vm515_vm6 = vmor %vm513_vm4, %vm514_vm2 }
 0x79f   :  { %v510_v8 = vsub.f32 1.0, %v509_v2 }
 0x7a0   :  { %v472_v9 = vmul.f32 %v1173_v63, %v471_v7 }
 0x7a1   :  { %v511_v10 = vmul.f32 %v1175_v0, %v510_v8 }
 0x7a2   :  { %v473_v12 = vadd.f32 %v1173_v63, %v472_v9 }
 0x7a3   :  { %v512_v13 = vadd.f32 %v1175_v0, %v511_v10 }
 0x7a4   :  { %v477_v5 = vsel %vm476_vm5, %v1173_v63, %v473_v12 }
 0x7a5   :  { %v516_v6 = vsel %vm515_vm6, %v1175_v0, %v512_v13  ;;  %v482_v19 = vsel %vm479_vm7, %v481_v16, %v477_v5 }
 0x7a6   :  { %v521_v21 = vsel %vm518_vm8, %v520_v17, %v516_v6  ;;  %v485_v24 = vmul.f32 %v482_v19, %v1457_v39 }
 0x7a7   :  { %v524_v28 = vmul.f32 %v521_v21, %v1452_v35 }
 0x803   :  { %v488_v18 = vpop.permute.xlu0 %487 }
 0x804   :  { %v527_v20 = vpop.permute.xlu1 %526  ;;  %v490_v22 = vmul.f32 %v488_v18, %v482_v19 }
 0x805   :  { %v529_v23 = vmul.f32 %v527_v20, %v521_v21 }
 0x806   :  { %492 = vrot.lane.b32.xlu2 %v490_v22, %s1302_s13 }
 0x807   :  { %531 = vrot.lane.b32.xlu0 %v529_v23, %s1302_s13 }
 0x860   :  { %v493_v25 = vpop.permute.xlu2 %492 }
 0x861   :  { %v1474_v26 = vadd.f32 %v493_v25, %v485_v24 }
 0x863   :  { %1176 = vtanh.f32 %v1474_v26 }
 0x869   :  { %v1177_v27 = vpop.eup %1176 }
 0x86a   :  { %498 = vrot.lane.b32.xlu1 %v1177_v27, %s1303_s14 }
 0x879   :  { %v532_v29 = vpop.permute.xlu0 %531 }
 0x87a   :  { %v1479_v30 = vadd.f32 %v532_v29, %v524_v28 }
 0x87c   :  { %1178 = vtanh.f32 %v1479_v30 }
 0x882   :  { %v1179_v31 = vpop.eup %1178 }
 0x883   :  { %537 = vrot.lane.b32.xlu2 %v1179_v31, %s1303_s14  ;;  %v697_v31 = vld [vmem:[#allocation2 + $0xa] sm:$0x3] }
 0x8dc   :  { %v499_v32 = vpop.permute.xlu1 %498 }
 0x8dd   :  { %v538_v33 = vpop.permute.xlu2 %537  ;;  %v501_v34 = vmul.f32 %v499_v32, %v482_v19  ;;  %v698_v32 = vld [vmem:[#allocation2 + $0x4] sm:$0x3] }
 0x8de   :  { %v540_v36 = vmul.f32 %v538_v33, %v521_v21 }
 0x8df   :  { %542 = vrot.lane.b32.xlu0 %v501_v34, %s1304_s15 }
 0x8e0   :  { %547 = vrot.lane.b32.xlu1 %v540_v36, %s1303_s14 }
 0x951   :  { %v543_v37 = vpop.permute.xlu0 %542 }
 0x952   :  { %545 = vst.msk [vmem:[#allocation3 + $0x6] sm:$0x3] %vm189_vm9, %v543_v37  ;;  %v548_v35 = vpop.permute.xlu1 %547 }
 0x953   :  { %550 = vst.msk [vmem:[#allocation3 + $0x8] sm:$0x3] %vm195_vm10, %v548_v35  ;;  %v551_v38 = vsel %vm41_vm0, %v543_v37, %v548_v35 }
 0x954   :  { %1092 = vmatmul.msk.f32.vlgmr.msra.gmra.mxu2 %vm78_vm11, %v551_v38 }
 0x9d7   :  { %v576_v39 = vpop.f32.mrf.mxu2 }
 0x9d8   :  { %v581_v42 = vadd.f32 %v579_v40, %v576_v39  ;;  %v620_v43 = vadd.f32 %v580_v41, %v576_v39 }
 0x9da   :  { %v582_v44 = vadd.f32 %v1397_v11, %v581_v42  ;;  %v621_v45 = vadd.f32 %v1397_v11, %v620_v43 }
 0x9dc   :  { %1180 = vtanh.f32 %v582_v44  ;;  %v1093_v48 = vmul.f32 -1.442695, %v582_v44  ;;  %v1094_v52 = vmul.f32 -1.442695, %v621_v45 }
 0x9dd   :  { %1182 = vtanh.f32 %v621_v45 }
 0x9de   :  { %1184 = vpow2.f32 %v1093_v48 }
 0x9e2   :  { %v1181_v46 = vpop.eup %1180 }
 0x9e3   :  { %v1183_v47 = vpop.eup %1182  ;;  %605 = vrot.lane.b32.xlu2 %v1181_v46, %s1301_s12 }
 0x9e4   :  { %644 = vrot.lane.b32.xlu0 %v1183_v47, %s1301_s12  ;;  %v1185_v49 = vpop.eup %1184 }
 0x9e5   :  { %v586_v50 = vadd.f32 1.0, %v1185_v49 }
 0x9e7   :  { %1186 = vrcp.f32 %v586_v50  ;;  %v598_v59 = vand.u32 2147483648, %v586_v50  ;;  %vm592_vm13 = vweird.f32 %v586_v50  ;;  %v596_v60 = vand.u32 2147483647, %v586_v50 }
 0x9e8   :  { %1188 = vpow2.f32 %v1094_v52 }
 0x9e9   :  { %v599_v62 = vor.u32 1.1754944e-38, %v598_v59  ;;  %vm597_vm15 = vcmp.eq.f32.partialorder %v596_v60, 8.507059e+37 }
 0x9ed   :  { %v1187_v51 = vpop.eup %1186 }
 0x9ee   :  { %v588_v53 = vmul.f32 %v1187_v51, %v586_v50  ;;  %v1189_v56 = vpop.eup %1188  ;;  %vm593_vm12 = vweird.f32 %v1187_v51 }
 0x9ef   :  { %v625_v57 = vadd.f32 1.0, %v1189_v56  ;;  %vm594_vm14 = vmor %vm592_vm13, %vm593_vm12 }
 0x9f0   :  { %v589_v54 = vsub.f32 1.0, %v588_v53 }
 0x9f1   :  { %1190 = vrcp.f32 %v625_v57  ;;  %v637_v12 = vand.u32 2147483648, %v625_v57  ;;  %vm631_vm2 = vweird.f32 %v625_v57  ;;  %v635_v13 = vand.u32 2147483647, %v625_v57 }
 0x9f2   :  { %v590_v55 = vmul.f32 %v1187_v51, %v589_v54 }
 0x9f3   :  { %v638_v15 = vor.u32 1.1754944e-38, %v637_v12  ;;  %vm636_vm4 = vcmp.eq.f32.partialorder %v635_v13, 8.507059e+37 }
 0x9f4   :  { %v591_v58 = vadd.f32 %v1187_v51, %v590_v55 }
 0x9f6   :  { %v595_v61 = vsel %vm594_vm14, %v1187_v51, %v591_v58 }
 0x9f7   :  { %v600_v0 = vsel %vm597_vm15, %v599_v62, %v595_v61  ;;  %v1191_v2 = vpop.eup %1190 }
 0x9f8   :  { %v627_v7 = vmul.f32 %v1191_v2, %v625_v57  ;;  %vm632_vm1 = vweird.f32 %v1191_v2  ;;  %v603_v6 = vmul.f32 %v600_v0, %v1474_v26 }
 0x9f9   :  { %vm633_vm3 = vmor %vm631_vm2, %vm632_vm1 }
 0x9fa   :  { %v628_v8 = vsub.f32 1.0, %v627_v7 }
 0x9fc   :  { %v629_v9 = vmul.f32 %v1191_v2, %v628_v8 }
 0x9fe   :  { %v630_v10 = vadd.f32 %v1191_v2, %v629_v9 }
 0xa00   :  { %v634_v14 = vsel %vm633_vm3, %v1191_v2, %v630_v10 }
 0xa01   :  { %v639_v4 = vsel %vm636_vm4, %v638_v15, %v634_v14 }
 0xa02   :  { %v642_v16 = vmul.f32 %v639_v4, %v1479_v30 }
 0xa3d   :  { %v606_v63 = vpop.permute.xlu2 %605 }
 0xa3e   :  { %v608_v1 = vmul.f32 %v606_v63, %v600_v0 }
 0xa40   :  { %610 = vrot.lane.b32.xlu1 %v608_v1, %s1302_s13 }
 0xa56   :  { %v645_v3 = vpop.permute.xlu0 %644 }
 0xa57   :  { %v647_v5 = vmul.f32 %v645_v3, %v639_v4 }
 0xa59   :  { %649 = vrot.lane.b32.xlu2 %v647_v5, %s1302_s13 }
 0xab2   :  { %v611_v17 = vpop.permute.xlu1 %610 }
 0xab3   :  { %v650_v18 = vpop.permute.xlu2 %649  ;;  %v1497_v19 = vadd.f32 %v611_v17, %v603_v6 }
 0xab4   :  { %v1499_v20 = vadd.f32 %v650_v18, %v642_v16 }
 0xab5   :  { %1192 = vtanh.f32 %v1497_v19 }
 0xab6   :  { %1194 = vtanh.f32 %v1499_v20 }
 0xabb   :  { %v1193_v21 = vpop.eup %1192 }
 0xabc   :  { %v1195_v22 = vpop.eup %1194  ;;  %616 = vrot.lane.b32.xlu0 %v1193_v21, %s1303_s14 }
 0xabd   :  { %655 = vrot.lane.b32.xlu1 %v1195_v22, %s1303_s14  ;;  %v815_v22 = vld [vmem:[#allocation2 + $0xc] sm:$0x3] }
 0xb2e   :  { %v617_v23 = vpop.permute.xlu0 %616 }
 0xb2f   :  { %v656_v24 = vpop.permute.xlu1 %655  ;;  %v619_v25 = vmul.f32 %v617_v23, %v600_v0  ;;  %v816_v23 = vld [vmem:[#allocation2 + $0x2] sm:$0x3] }
 0xb30   :  { %v658_v26 = vmul.f32 %v656_v24, %v639_v4 }
 0xb31   :  { %660 = vrot.lane.b32.xlu2 %v619_v25, %s1304_s15 }
 0xb32   :  { %665 = vrot.lane.b32.xlu0 %v658_v26, %s1303_s14 }
 0xb8b   :  { %v661_v27 = vpop.permute.xlu2 %660 }
 0xb8c   :  { %663 = vst.msk [vmem:[#allocation3 + $0x8] sm:$0x3] %vm189_vm9, %v661_v27 }
 0xba4   :  { %v666_v28 = vpop.permute.xlu0 %665 }
 0xba5   :  { %668 = vst.msk [vmem:[#allocation3 + $0x6] sm:$0x3] %vm195_vm10, %v666_v28  ;;  %v669_v29 = vsel %vm41_vm0, %v661_v27, %v666_v28 }
 0xba6   :  { %1095 = vmatmul.msk.f32.vlgmr.msra.gmra.mxu3 %vm78_vm11, %v669_v29 }
 0xc29   :  { %v694_v30 = vpop.f32.mrf.mxu3 }
 0xc2a   :  { %v699_v33 = vadd.f32 %v697_v31, %v694_v30  ;;  %v738_v34 = vadd.f32 %v698_v32, %v694_v30 }
 0xc2c   :  { %v700_v36 = vadd.f32 %v1397_v11, %v699_v33  ;;  %v739_v37 = vadd.f32 %v1397_v11, %v738_v34 }
 0xc2e   :  { %1196 = vtanh.f32 %v700_v36  ;;  %v1097_v39 = vmul.f32 -1.442695, %v739_v37  ;;  %v1096_v43 = vmul.f32 -1.442695, %v700_v36 }
 0xc2f   :  { %1198 = vtanh.f32 %v739_v37 }
 0xc30   :  { %1200 = vpow2.f32 %v1097_v39 }
 0xc34   :  { %v1197_v35 = vpop.eup %1196 }
 0xc35   :  { %v1199_v38 = vpop.eup %1198  ;;  %723 = vrot.lane.b32.xlu1 %v1197_v35, %s1301_s12 }
 0xc36   :  { %762 = vrot.lane.b32.xlu2 %v1199_v38, %s1301_s12  ;;  %v1201_v40 = vpop.eup %1200 }
 0xc37   :  { %v743_v41 = vadd.f32 1.0, %v1201_v40 }
 0xc39   :  { %1202 = vrcp.f32 %v743_v41  ;;  %v755_v50 = vand.u32 2147483648, %v743_v41  ;;  %vm749_vm6 = vweird.f32 %v743_v41  ;;  %v753_v51 = vand.u32 2147483647, %v743_v41 }
 0xc3a   :  { %1204 = vpow2.f32 %v1096_v43 }
 0xc3b   :  { %v756_v53 = vor.u32 1.1754944e-38, %v755_v50  ;;  %vm754_vm8 = vcmp.eq.f32.partialorder %v753_v51, 8.507059e+37 }
 0xc3f   :  { %v1203_v42 = vpop.eup %1202 }
 0xc40   :  { %v745_v44 = vmul.f32 %v1203_v42, %v743_v41  ;;  %v1205_v46 = vpop.eup %1204  ;;  %vm750_vm5 = vweird.f32 %v1203_v42 }
 0xc41   :  { %v704_v48 = vadd.f32 1.0, %v1205_v46  ;;  %vm751_vm7 = vmor %vm749_vm6, %vm750_vm5 }
 0xc42   :  { %v746_v45 = vsub.f32 1.0, %v745_v44 }
 0xc43   :  { %1206 = vrcp.f32 %v704_v48  ;;  %v716_v62 = vand.u32 2147483648, %v704_v48  ;;  %vm710_vm13 = vweird.f32 %v704_v48  ;;  %v714_v63 = vand.u32 2147483647, %v704_v48 }
 0xc44   :  { %v747_v47 = vmul.f32 %v1203_v42, %v746_v45 }
 0xc45   :  { %v717_v1 = vor.u32 1.1754944e-38, %v716_v62  ;;  %vm715_vm15 = vcmp.eq.f32.partialorder %v714_v63, 8.507059e+37 }
 0xc46   :  { %v748_v49 = vadd.f32 %v1203_v42, %v747_v47 }
 0xc48   :  { %v752_v52 = vsel %vm751_vm7, %v1203_v42, %v748_v49 }
 0xc49   :  { %v757_v55 = vsel %vm754_vm8, %v756_v53, %v752_v52  ;;  %v1207_v56 = vpop.eup %1206 }
 0xc4a   :  { %v706_v58 = vmul.f32 %v1207_v56, %v704_v48  ;;  %vm711_vm12 = vweird.f32 %v1207_v56  ;;  %v760_v9 = vmul.f32 %v757_v55, %v1499_v20 }
 0xc4b   :  { %vm712_vm14 = vmor %vm710_vm13, %vm711_vm12 }
 0xc4c   :  { %v707_v59 = vsub.f32 1.0, %v706_v58 }
 0xc4e   :  { %v708_v60 = vmul.f32 %v1207_v56, %v707_v59 }
 0xc50   :  { %v709_v61 = vadd.f32 %v1207_v56, %v708_v60 }
 0xc52   :  { %v713_v0 = vsel %vm712_vm14, %v1207_v56, %v709_v61 }
 0xc53   :  { %v718_v7 = vsel %vm715_vm15, %v717_v1, %v713_v0 }
 0xc54   :  { %v721_v14 = vmul.f32 %v718_v7, %v1497_v19 }
 0xc90   :  { %v763_v54 = vpop.permute.xlu2 %762 }
 0xc91   :  { %v765_v57 = vmul.f32 %v763_v54, %v757_v55 }
 0xc93   :  { %767 = vrot.lane.b32.xlu1 %v765_v57, %s1302_s13 }
 0xca7   :  { %v724_v2 = vpop.permute.xlu1 %723 }
 0xca8   :  { %v726_v8 = vmul.f32 %v724_v2, %v718_v7 }
 0xcaa   :  { %728 = vrot.lane.b32.xlu0 %v726_v8, %s1302_s13  ;;  %v908_v8 = vld [vmem:[%s1606_s2 + $0x10] sm:$0xff] }
 0xd05   :  { %v768_v10 = vpop.permute.xlu1 %767 }
 0xd06   :  { %v1518_v12 = vadd.f32 %v768_v10, %v760_v9  ;;  %v907_v9 = vld [vmem:[%s1606_s2 + $0x8] sm:$0xff]  ;;  %v906_v10 = vld [vmem:[%s1606_s2] sm:$0xff] }
 0xd08   :  { %1208 = vtanh.f32 %v1518_v12 }
 0xd0e   :  { %v1209_v13 = vpop.eup %1208 }
 0xd0f   :  { %773 = vrot.lane.b32.xlu0 %v1209_v13, %s1303_s14 }
 0xd1c   :  { %v729_v15 = vpop.permute.xlu0 %728 }
 0xd1d   :  { %v1523_v3 = vadd.f32 %v729_v15, %v721_v14 }
 0xd1f   :  { %1210 = vtanh.f32 %v1523_v3 }
 0xd25   :  { %v1211_v4 = vpop.eup %1210 }
 0xd26   :  { %734 = vrot.lane.b32.xlu2 %v1211_v4, %s1303_s14 }
 0xd80   :  { %v735_v5 = vpop.permute.xlu2 %734 }
 0xd81   :  { %v774_v6 = vpop.permute.xlu0 %773  ;;  %v737_v16 = vmul.f32 %v735_v5, %v718_v7  ;;  %v909_v7 = vld [vmem:[%s1606_s2 + $0x18] sm:$0xff] }
 0xd82   :  { %v776_v17 = vmul.f32 %v774_v6, %v757_v55  ;;  %925 = vmatpush.msra.mxu1 %v909_v7 }
 0xd83   :  { %778 = vrot.lane.b32.xlu1 %v737_v16, %s1304_s15  ;;  %v933_v16 = vld [vmem:[#allocation2 + $0xe] sm:$0x3] }
 0xd84   :  { %783 = vrot.lane.b32.xlu2 %v776_v17, %s1303_s14  ;;  %926 = vmatpush.msra.mxu1 %v908_v8  ;;  %v934_v17 = vld [vmem:[#allocation2] sm:$0x3]  ;;  %v1026_v8 = vld [vmem:[%s1608_s4 + $0x8] sm:$0xff] }
 0xd86   :  { %927 = vmatpush.msra.mxu1 %v907_v9  ;;  %v1025_v9 = vld [vmem:[%s1608_s4] sm:$0xff] }
 0xd88   :  { %928 = vmatpush.msra.mxu1 %v906_v10 }
 0xdde   :  { %v784_v18 = vpop.permute.xlu2 %783 }
 0xddf   :  { %786 = vst.msk [vmem:[#allocation3 + $0x4] sm:$0x3] %vm195_vm10, %v784_v18 }
 0xdf5   :  { %v779_v19 = vpop.permute.xlu1 %778 }
 0xdf6   :  { %781 = vst.msk [vmem:[#allocation3 + $0xa] sm:$0x3] %vm189_vm9, %v779_v19  ;;  %v787_v20 = vsel %vm41_vm0, %v779_v19, %v784_v18 }
 0xdf7   :  { %1098 = vmatmul.msk.f32.vlgmr.msrb.gmra.mxu0 %vm78_vm11, %v787_v20  ;;  %v1244_v20 = vld [vmem:[%s1607_s3] ss:$0 sm:$0xff] }
 0xe74   :  { %v812_v21 = vpop.f32.mrf.mxu0 }
 0xe75   :  { %v817_v24 = vadd.f32 %v815_v22, %v812_v21  ;;  %v856_v25 = vadd.f32 %v816_v23, %v812_v21 }
 0xe77   :  { %v818_v26 = vadd.f32 %v1397_v11, %v817_v24  ;;  %v857_v27 = vadd.f32 %v1397_v11, %v856_v25 }
 0xe79   :  { %1212 = vtanh.f32 %v818_v26  ;;  %v1099_v30 = vmul.f32 -1.442695, %v818_v26  ;;  %v1100_v31 = vmul.f32 -1.442695, %v857_v27 }
 0xe7a   :  { %1214 = vtanh.f32 %v857_v27 }
 0xe7b   :  { %1216 = vpow2.f32 %v1099_v30 }
 0xe7c   :  { %1218 = vpow2.f32 %v1100_v31 }
 0xe7f   :  { %v1213_v28 = vpop.eup %1212 }
 0xe80   :  { %v1215_v29 = vpop.eup %1214  ;;  %841 = vrot.lane.b32.xlu0 %v1213_v28, %s1301_s12 }
 0xe81   :  { %880 = vrot.lane.b32.xlu1 %v1215_v29, %s1301_s12  ;;  %v1217_v32 = vpop.eup %1216 }
 0xe82   :  { %v1219_v33 = vpop.eup %1218  ;;  %v822_v34 = vadd.f32 1.0, %v1217_v32 }
 0xe83   :  { %v861_v36 = vadd.f32 1.0, %v1219_v33 }
 0xe84   :  { %1220 = vrcp.f32 %v822_v34  ;;  %v834_v45 = vand.u32 2147483648, %v822_v34  ;;  %vm828_vm3 = vweird.f32 %v822_v34  ;;  %v832_v47 = vand.u32 2147483647, %v822_v34 }
 0xe85   :  { %1222 = vrcp.f32 %v861_v36  ;;  %v873_v46 = vand.u32 2147483648, %v861_v36  ;;  %vm867_vm4 = vweird.f32 %v861_v36  ;;  %v871_v48 = vand.u32 2147483647, %v861_v36 }
 0xe86   :  { %v835_v51 = vor.u32 1.1754944e-38, %v834_v45  ;;  %vm833_vm7 = vcmp.eq.f32.partialorder %v832_v47, 8.507059e+37 }
 0xe87   :  { %v874_v52 = vor.u32 1.1754944e-38, %v873_v46  ;;  %vm872_vm8 = vcmp.eq.f32.partialorder %v871_v48, 8.507059e+37 }
 0xe8a   :  { %v1221_v37 = vpop.eup %1220 }
 0xe8b   :  { %v1223_v11 = vpop.eup %1222  ;;  %v824_v35 = vmul.f32 %v1221_v37, %v822_v34  ;;  %vm829_vm1 = vweird.f32 %v1221_v37 }
 0xe8c   :  { %v863_v38 = vmul.f32 %v1223_v11, %v861_v36  ;;  %vm868_vm2 = vweird.f32 %v1223_v11  ;;  %vm830_vm5 = vmor %vm828_vm3, %vm829_vm1 }
 0xe8d   :  { %v825_v39 = vsub.f32 1.0, %v824_v35  ;;  %vm869_vm6 = vmor %vm867_vm4, %vm868_vm2 }
 0xe8e   :  { %v864_v40 = vsub.f32 1.0, %v863_v38 }
 0xe8f   :  { %v826_v41 = vmul.f32 %v1221_v37, %v825_v39 }
 0xe90   :  { %v865_v42 = vmul.f32 %v1223_v11, %v864_v40 }
 0xe91   :  { %v827_v43 = vadd.f32 %v1221_v37, %v826_v41 }
 0xe92   :  { %v866_v44 = vadd.f32 %v1223_v11, %v865_v42 }
 0xe93   :  { %v831_v49 = vsel %vm830_vm5, %v1221_v37, %v827_v43 }
 0xe94   :  { %v870_v50 = vsel %vm869_vm6, %v1223_v11, %v866_v44  ;;  %v836_v54 = vsel %vm833_vm7, %v835_v51, %v831_v49 }
 0xe95   :  { %v875_v56 = vsel %vm872_vm8, %v874_v52, %v870_v50  ;;  %v839_v59 = vmul.f32 %v836_v54, %v1523_v3 }
 0xe96   :  { %v878_v63 = vmul.f32 %v875_v56, %v1518_v12 }
 0xef2   :  { %v842_v53 = vpop.permute.xlu0 %841 }
 0xef3   :  { %v881_v55 = vpop.permute.xlu1 %880  ;;  %v844_v57 = vmul.f32 %v842_v53, %v836_v54 }
 0xef4   :  { %v883_v58 = vmul.f32 %v881_v55, %v875_v56 }
 0xef5   :  { %846 = vrot.lane.b32.xlu2 %v844_v57, %s1302_s13 }
 0xef6   :  { %885 = vrot.lane.b32.xlu0 %v883_v58, %s1302_s13 }
 0xf4f   :  { %v847_v60 = vpop.permute.xlu2 %846 }
 0xf50   :  { %v1540_v61 = vadd.f32 %v847_v60, %v839_v59 }
 0xf52   :  { %1224 = vtanh.f32 %v1540_v61 }
 0xf58   :  { %v1225_v62 = vpop.eup %1224 }
 0xf59   :  { %852 = vrot.lane.b32.xlu1 %v1225_v62, %s1303_s14 }
 0xf68   :  { %v886_v0 = vpop.permute.xlu0 %885 }
 0xf69   :  { %v1545_v1 = vadd.f32 %v886_v0, %v878_v63 }
 0xf6b   :  { %1226 = vtanh.f32 %v1545_v1 }
 0xf71   :  { %v1227_v2 = vpop.eup %1226 }
 0xf72   :  { %891 = vrot.lane.b32.xlu2 %v1227_v2, %s1303_s14 }
 0xfcb   :  { %v853_v12 = vpop.permute.xlu1 %852 }
 0xfcc   :  { %v892_v13 = vpop.permute.xlu2 %891  ;;  %v855_v14 = vmul.f32 %v853_v12, %v836_v54 }
 0xfcd   :  { %v894_v15 = vmul.f32 %v892_v13, %v875_v56 }
 0xfce   :  { %896 = vrot.lane.b32.xlu0 %v855_v14, %s1304_s15 }
 0xfcf   :  { %901 = vrot.lane.b32.xlu1 %v894_v15, %s1303_s14 }
0x1040   :  { %v897_v3 = vpop.permute.xlu0 %896 }
0x1041   :  { %899 = vst.msk [vmem:[#allocation3 + $0xc] sm:$0x3] %vm189_vm9, %v897_v3  ;;  %v902_v4 = vpop.permute.xlu1 %901 }
0x1042   :  { %904 = vst.msk [vmem:[#allocation3 + $0x2] sm:$0x3] %vm195_vm10, %v902_v4  ;;  %v905_v5 = vsel %vm41_vm0, %v897_v3, %v902_v4 }
0x1043   :  { %1101 = vmatmul.msk.f32.vlgmr.msra.gmra.mxu1 %vm78_vm11, %v905_v5 }
0x10c0   :  { %v930_v6 = vpop.f32.mrf.mxu1 }
0x10c1   :  { %v935_v18 = vadd.f32 %v933_v16, %v930_v6  ;;  %v974_v19 = vadd.f32 %v934_v17, %v930_v6 }
0x10c3   :  { %v936_v21 = vadd.f32 %v1244_v20, %v935_v18  ;;  %v975_v22 = vadd.f32 %v1244_v20, %v974_v19 }
0x10c5   :  { %1228 = vtanh.f32 %v936_v21  ;;  %v1103_v25 = vmul.f32 -1.442695, %v975_v22  ;;  %v1102_v29 = vmul.f32 -1.442695, %v936_v21 }
0x10c6   :  { %1230 = vtanh.f32 %v975_v22 }
0x10c7   :  { %1232 = vpow2.f32 %v1103_v25 }
0x10cb   :  { %v1229_v23 = vpop.eup %1228 }
0x10cc   :  { %v1231_v24 = vpop.eup %1230  ;;  %959 = vrot.lane.b32.xlu0 %v1229_v23, %s1301_s12 }
0x10cd   :  { %998 = vrot.lane.b32.xlu2 %v1231_v24, %s1301_s12  ;;  %v1233_v26 = vpop.eup %1232 }
0x10ce   :  { %v979_v27 = vadd.f32 1.0, %v1233_v26 }
0x10d0   :  { %1234 = vrcp.f32 %v979_v27  ;;  %v991_v37 = vand.u32 2147483648, %v979_v27  ;;  %vm985_vm13 = vweird.f32 %v979_v27  ;;  %v989_v11 = vand.u32 2147483647, %v979_v27 }
0x10d1   :  { %1236 = vpow2.f32 %v1102_v29 }
0x10d2   :  { %v992_v38 = vor.u32 1.1754944e-38, %v991_v37  ;;  %vm990_vm15 = vcmp.eq.f32.partialorder %v989_v11, 8.507059e+37 }
0x10d6   :  { %v1235_v28 = vpop.eup %1234 }
0x10d7   :  { %v981_v30 = vmul.f32 %v1235_v28, %v979_v27  ;;  %v1237_v32 = vpop.eup %1236  ;;  %vm986_vm12 = vweird.f32 %v1235_v28 }
0x10d8   :  { %v940_v34 = vadd.f32 1.0, %v1237_v32  ;;  %vm987_vm14 = vmor %vm985_vm13, %vm986_vm12 }
0x10d9   :  { %v982_v31 = vsub.f32 1.0, %v981_v30 }
0x10da   :  { %1238 = vrcp.f32 %v940_v34  ;;  %v952_v47 = vand.u32 2147483648, %v940_v34  ;;  %vm946_vm2 = vweird.f32 %v940_v34  ;;  %v950_v48 = vand.u32 2147483647, %v940_v34 }
0x10db   :  { %v983_v33 = vmul.f32 %v1235_v28, %v982_v31 }
0x10dc   :  { %v953_v50 = vor.u32 1.1754944e-38, %v952_v47  ;;  %vm951_vm4 = vcmp.eq.f32.partialorder %v950_v48, 8.507059e+37 }
0x10dd   :  { %v984_v36 = vadd.f32 %v1235_v28, %v983_v33 }
0x10df   :  { %v988_v35 = vsel %vm987_vm14, %v1235_v28, %v984_v36 }
0x10e0   :  { %v993_v40 = vsel %vm990_vm15, %v992_v38, %v988_v35  ;;  %v1239_v41 = vpop.eup %1238 }
0x10e1   :  { %v942_v43 = vmul.f32 %v1239_v41, %v940_v34  ;;  %vm947_vm1 = vweird.f32 %v1239_v41  ;;  %v996_v55 = vmul.f32 %v993_v40, %v1545_v1  ;;  %v1027_v1 = vld [vmem:[%s1608_s4 + $0x10] sm:$0xff] }
0x10e2   :  { %vm948_vm3 = vmor %vm946_vm2, %vm947_vm1 }
0x10e3   :  { %v943_v44 = vsub.f32 1.0, %v942_v43 }
0x10e5   :  { %v944_v45 = vmul.f32 %v1239_v41, %v943_v44 }
0x10e7   :  { %v945_v46 = vadd.f32 %v1239_v41, %v944_v45 }
0x10e9   :  { %v949_v49 = vsel %vm948_vm3, %v1239_v41, %v945_v46 }
0x10ea   :  { %v954_v52 = vsel %vm951_vm4, %v953_v50, %v949_v49 }
0x10eb   :  { %v957_v54 = vmul.f32 %v954_v52, %v1540_v61  ;;  %v1028_v61 = vld [vmem:[%s1608_s4 + $0x18] sm:$0xff] }
0x10ec   :  { %1047 = vmatpush.msrb.mxu2 %v1028_v61 }
0x10ee   :  { %1048 = vmatpush.msrb.mxu2 %v1027_v1 }
0x10f0   :  { %1049 = vmatpush.msrb.mxu2 %v1026_v8 }
0x10f2   :  { %1050 = vmatpush.msrb.mxu2 %v1025_v9 }
0x1127   :  { %v999_v39 = vpop.permute.xlu2 %998 }
0x1128   :  { %v1001_v42 = vmul.f32 %v999_v39, %v993_v40 }
0x112a   :  { %1003 = vrot.lane.b32.xlu1 %v1001_v42, %s1302_s13 }
0x113e   :  { %v960_v51 = vpop.permute.xlu0 %959 }
0x113f   :  { %v962_v53 = vmul.f32 %v960_v51, %v954_v52 }
0x1141   :  { %964 = vrot.lane.b32.xlu2 %v962_v53, %s1302_s13 }
0x119b   :  { %v965_v56 = vpop.permute.xlu2 %964 }
0x119c   :  { %v1004_v57 = vpop.permute.xlu1 %1003  ;;  %v967_v58 = vadd.f32 %v965_v56, %v957_v54 }
0x119d   :  { %v1006_v59 = vadd.f32 %v1004_v57, %v996_v55 }
0x119e   :  { %1240 = vtanh.f32 %v967_v58 }
0x119f   :  { %1242 = vtanh.f32 %v1006_v59 }
0x11a4   :  { %v1241_v60 = vpop.eup %1240 }
0x11a5   :  { %v1243_v62 = vpop.eup %1242  ;;  %970 = vrot.lane.b32.xlu1 %v1241_v60, %s1303_s14 }
0x11a6   :  { %1009 = vrot.lane.b32.xlu0 %v1243_v62, %s1303_s14 }
0x1217   :  { %v971_v63 = vpop.permute.xlu1 %970 }
0x1218   :  { %v1010_v0 = vpop.permute.xlu0 %1009  ;;  %v973_v2 = vmul.f32 %v971_v63, %v954_v52 }
0x1219   :  { %v1012_v7 = vmul.f32 %v1010_v0, %v993_v40 }
0x121a   :  { %1014 = vrot.lane.b32.xlu0 %v973_v2, %s1304_s15 }
0x121b   :  { %1019 = vrot.lane.b32.xlu2 %v1012_v7, %s1303_s14 }
0x1275   :  { %v1020_v10 = vpop.permute.xlu2 %1019 }
0x1276   :  { %1022 = vst.msk [vmem:[#allocation3] sm:$0x3] %vm195_vm10, %v1020_v10 }
0x127d   :  { %v1023_v12 = vld [vmem:[#allocation3] sm:$0xff] }
0x127e   :  { %1104 = vmatmul.msk.f32.vlgmr.msrb.gmra.mxu2 %vm78_vm11, %v1023_v12 }
0x128c   :  { %v1015_v13 = vpop.permute.xlu0 %1014 }
0x128d   :  { %1017 = vst.msk [vmem:[#allocation3 + $0xe] sm:$0x3] %vm189_vm9, %v1015_v13 }
0x1294   :  { %v1024_v14 = vld [vmem:[#allocation3 + $0x8] sm:$0xff] }
0x1295   :  { %1105 = vmatmul.msk.f32.gmra.mxu2 %vm78_vm11, %v1024_v14 }
0x1301   :  { %v1052_v15 = vpop.f32.mrf.mxu2 }
0x1302   :  { %1058 = vst.msk [vmem:[#allocation7] sm:$0xff] %vm41_vm0, %v1052_v15 }
0x1318   :  { %v1055_v3 = vpop.f32.mrf.mxu2 }
0x1319   :  { %1059 = vst.msk [vmem:[#allocation7 + $0x8] sm:$0xff] %vm41_vm0, %v1055_v3 }
0x131a   :  { %1072 = dma.vmem_to_hbm [thread:$0]  %s1065_s9, 256, %s1067_s0, [#allocation6], %s1298_s23, %s1298_s23, %s1299_s24  }
0x131b   :  { %1295 = dma.done.wait [#allocation6], 256  }
0x131c   :  { %1296 = vsyncadd [#allocation6], 4294967040 }
0x131d   :  { %1077 = vsyncpa [#allocation5], 1 }
0x131e   :  { %1078 = vsyncpa [#allocation6], 1 }

</bundles_post_ra>
